<compile_context>
chip_gen: v7x
topology: tpu7x:2x2x1
jax: 0.10.0
libtpu: 0.0.40
codegen_flags: <defaults>
</compile_context>

<pallas_src>
import functools
import math

import numpy as np
import jax
import jax.numpy as jnp
from jax.experimental import pallas as pl
from jax.experimental.pallas import tpu as pltpu

ALPHA = 1.1448          # soft-clamp coefficient from the reference module
MAX_TILE = 16384        # upper bound on spatial lanes per grid step


def _round_up(x, m):
    return (x + m - 1) // m * m


def _vmem_capacity_bytes():
    """VMEM capacity of the current TPU, with a conservative fallback."""
    try:
        info = pltpu.get_tpu_info()
        cap = getattr(info, "vmem_capacity_bytes", None)
        if cap:
            return int(cap)
    except Exception:
        pass
    return 64 * 2 ** 20   # v7x per-TC VMEM; safe everywhere


def _per_lane_bytes(cp, two_f):
    """Rough per-output-lane VMEM footprint of one grid step."""
    return (2 * 2 * cp          # c main block (bf16), double buffered
            + 9 * cp * 2        # in-kernel patches value (bf16)
            + cp * 2            # concatenated halo window (bf16)
            + 2 * two_f * 4     # hidden activations (f32) + relu temp
            + 3 * 2 * 8 * 4     # x2 / mask / y2 blocks (sublane-padded, dbl buf)
            + 64)               # (1, tile) f32 temporaries (s, t, clamp, ...)


def _choose_tile(lout, cp, two_f, vmem_cap):
    budget = max(vmem_cap // 4, 8 * 2 ** 20)
    tile = budget // _per_lane_bytes(cp, two_f)
    tile = min(tile, MAX_TILE, _round_up(lout, 128))
    tile = max(128, (tile // 128) * 128)
    return int(tile)


def _atan_f32(x):
    """float32 arctan from basic VPU/EUP ops (Cephes atanf).

    The two range-reduction reciprocals start on the EUP (approx) and get one
    Newton step each, so the jacobian (a sum of atan over all HW positions)
    keeps near-f32 accuracy.
    """
    sign = jnp.where(x < 0.0, -1.0, 1.0).astype(jnp.float32)
    ax = jnp.abs(x)
    t3p8 = jnp.float32(2.414213562373095)    # tan(3*pi/8)
    tp8 = jnp.float32(0.4142135623730951)    # tan(pi/8)
    big = ax > t3p8
    med = jnp.logical_and(jnp.logical_not(big), ax > tp8)

    inv_ax = pl.reciprocal(ax, approx=True)               # EUP
    inv_ax = inv_ax * (2.0 - ax * inv_ax)                 # 1 Newton step
    axp1 = ax + 1.0
    inv_ax1 = pl.reciprocal(axp1, approx=True)            # EUP
    inv_ax1 = inv_ax1 * (2.0 - axp1 * inv_ax1)            # 1 Newton step

    x_r = jnp.where(big, -inv_ax, jnp.where(med, (ax - 1.0) * inv_ax1, ax))
    y0 = jnp.where(big, jnp.float32(np.pi / 2),
                   jnp.where(med, jnp.float32(np.pi / 4), jnp.float32(0.0)))
    z = x_r * x_r
    p = ((jnp.float32(8.05374449538e-2) * z - jnp.float32(1.38776856032e-1)) * z
         + jnp.float32(1.99777106478e-1)) * z - jnp.float32(3.33329491539e-1)
    y = y0 + p * z * x_r + x_r
    return sign * y


def _coupling_kernel(c_ref, halo_ref, x2_ref, mask_ref,
                     w1_ref, b1_ref, w2_ref, b2_ref,
                     out_ref, jac_ref, *, inverse, wp, tile):
    i_inner = pl.program_id(2)               # inner spatial axis (jac reduction)

    cmain = c_ref[0]                          # (Cp, TILE)    bf16
    chalo = halo_ref[0, 0]                    # (Cp, HALO_P)  bf16
    cwin = jnp.concatenate([cmain, chalo], axis=1)     # (Cp, TILE+HALO_P)

    # Form the nine 3x3 taps in-register: tap(dy,dx) is a constant flat offset
    # dy*Wp+dx in the row-stride-Wp layout (static lane shifts -> XLU slot).
    taps = []
    for dy in range(3):
        for dx in range(3):
            off = dy * wp + dx
            taps.append(cwin[:, off:off + tile])
    patches = jnp.concatenate(taps, axis=0)            # (9*Cp, TILE) bf16

    x2 = x2_ref[0]                            # (1, TILE) f32
    mask = mask_ref[...]                      # (1, TILE) f32 (1 = valid lane)

    # Fused s||t first stage: single MXU GEMM over the in-VMEM patch buffer.
    h = jnp.dot(w1_ref[...], patches, preferred_element_type=jnp.float32)
    h = jnp.maximum(h + b1_ref[...], 0.0)               # (2F, TILE)
    # Block-diagonal second stage: row 0 -> s, row 1 -> t.
    st = jnp.dot(w2_ref[...], h, preferred_element_type=jnp.float32) + b2_ref[...]

    s = st[0:1, :]
    t = st[1:2, :]
    clamp = ALPHA * _atan_f32(s)              # (1, TILE), lane-dense

    if inverse:                               # sample_the_data=True path
        y2 = (x2 - t) * jnp.exp(-clamp)
        sign = -1.0
    else:                                     # default forward path
        y2 = jnp.exp(clamp) * x2 + t
        sign = 1.0
    out_ref[0] = y2.astype(out_ref.dtype)     # padded lanes hold garbage (masked later)

    # Per-chunk jacobian partial: resident across the inner (arbitrary) axis.
    @pl.when(i_inner == 0)
    def _():
        jac_ref[0, 0] = jnp.zeros((1, 1), jnp.float32)
    jac_ref[0, 0] = jac_ref[0, 0] + sign * jnp.sum(clamp * mask, keepdims=True)


def _pallas_coupling(cflat, halos, x2f, mask, w1_T, b1, w2c, b2, *,
                     inverse, wp, tile, n_outer, n_inner, lout_pad, vmem_limit):
    N, cp, _ = cflat.shape
    twoF = w1_T.shape[0]
    halo_p = halos.shape[-1]

    kernel = functools.partial(_coupling_kernel, inverse=inverse, wp=wp, tile=tile)

    grid_spec = pltpu.PrefetchScalarGridSpec(
        num_scalar_prefetch=0,
        grid=(N, n_outer, n_inner),
        in_specs=[
            # conditional tensor tile (bf16, spatial on lanes)
            pl.BlockSpec((1, cp, tile), lambda n, o, i: (n, 0, o * n_inner + i)),
            # right halo for the 3x3 taps of this tile
            pl.BlockSpec((1, 1, cp, halo_p),
                         lambda n, o, i: (n, o * n_inner + i, 0, 0)),
            # x2 tile
            pl.BlockSpec((1, 1, tile), lambda n, o, i: (n, 0, o * n_inner + i)),
            # validity mask tile (shared across batch)
            pl.BlockSpec((1, tile), lambda n, o, i: (0, o * n_inner + i)),
            # fused s||t first-stage weights (bf16, resident)
            pl.BlockSpec((twoF, 9 * cp), lambda n, o, i: (0, 0)),
            pl.BlockSpec((twoF, 1), lambda n, o, i: (0, 0)),       # fused b1
            pl.BlockSpec((2, twoF), lambda n, o, i: (0, 0)),       # block-diag w2
            pl.BlockSpec((2, 1), lambda n, o, i: (0, 0)),          # fused b2
        ],
        out_specs=[
            pl.BlockSpec((1, 1, tile), lambda n, o, i: (n, 0, o * n_inner + i)),
            pl.BlockSpec((1, 1, 1, 1), lambda n, o, i: (n, o, 0, 0)),
        ],
    )
    out_shape = (
        jax.ShapeDtypeStruct((N, 1, lout_pad), jnp.float32),
        jax.ShapeDtypeStruct((N, n_outer, 1, 1), jnp.float32),
    )
    return pl.pallas_call(
        kernel,
        grid_spec=grid_spec,
        out_shape=out_shape,
        compiler_params=pltpu.CompilerParams(
            dimension_semantics=("parallel", "parallel", "arbitrary"),
            vmem_limit_bytes=vmem_limit),
    )(cflat, halos, x2f, mask, w1_T, b1, w2c, b2)


def coupling_one_side_forward(x, c, params, sample_the_data=False):
    """Mirrors CouplingOneSide.forward.  x: (N,1,H,W), c: (N,C,H,W)  (NCHW).

    Returns (output, jacobian) — output as returned by forward(), jacobian as
    stored in self.jacobian_output (shape (N,)).
    """
    N, cx, H, W = x.shape
    assert cx == 1, "x must have a single channel (torch.split(x, [0, 1], dim=1))"
    x1 = x[:, :0]                   # zero-channel split, exactly like torch.split([0,1])

    C = c.shape[1]
    F = params["s"]["w1"].shape[-1]
    Wp = W + 2                       # row stride of the zero-padded image
    lout = H * Wp                    # flat output extent (incl. 2 pad cols / row)
    cp = _round_up(max(C, 1), 16)    # channel pad for bf16 sublane tiling
    halo_p = _round_up(2 * Wp + 2, 128)

    vmem_cap = _vmem_capacity_bytes()
    tile = _choose_tile(lout, cp, 2 * F, vmem_cap)
    n_tiles = -(-lout // tile)
    lout_pad = n_tiles * tile
    if n_tiles % 2 == 0:             # feed both v7x TensorCores at small batch
        n_outer, n_inner = 2, n_tiles // 2
    else:
        n_outer, n_inner = 1, n_tiles
    lc_total = lout_pad + halo_p

    # --- conditional tensor: NCHW -> bf16 -> spatial zero-pad -> flat (stride Wp)
    c_bf = c.astype(jnp.bfloat16)
    cpad = jnp.pad(c_bf, ((0, 0), (0, 0), (1, 1), (1, 1)))
    cflat = cpad.reshape(N, C, (H + 2) * Wp)
    cflat = jnp.pad(cflat, ((0, 0), (0, cp - C), (0, lc_total - (H + 2) * Wp)))

    # per-tile right halos (tiny: n_tiles * Cp * HALO_P bf16)
    halos = jnp.stack(
        [cflat[:, :, (j + 1) * tile:(j + 1) * tile + halo_p] for j in range(n_tiles)],
        axis=1)                                              # (N, n_tiles, Cp, HALO_P)

    # --- x2 in the same row-stride-Wp flat layout
    x2 = jnp.pad(x[:, 0:1].astype(jnp.float32), ((0, 0), (0, 0), (0, 0), (0, 2)))
    x2f = jnp.pad(x2.reshape(N, 1, lout), ((0, 0), (0, 0), (0, lout_pad - lout)))

    # --- validity mask (pad columns / tail lanes contribute 0 to the jacobian)
    ii = jnp.arange(lout_pad, dtype=jnp.int32)
    valid = jnp.logical_and(ii % Wp < W, ii < lout)
    mask = valid.astype(jnp.float32).reshape(1, lout_pad)

    # --- fused + padded weights
    w1_cat = jnp.concatenate([params["s"]["w1"], params["t"]["w1"]], axis=-1)  # (3,3,C,2F)
    w1_cat = jnp.pad(w1_cat, ((0, 0), (0, 0), (0, cp - C), (0, 0)))            # (3,3,Cp,2F)
    w1_T = jnp.transpose(w1_cat.reshape(9 * cp, 2 * F), (1, 0)).astype(jnp.bfloat16)

    b1 = jnp.concatenate([params["s"]["b1"], params["t"]["b1"]]) \
            .reshape(2 * F, 1).astype(jnp.float32)
    zF = jnp.zeros((F,), jnp.float32)
    w2c = jnp.stack([
        jnp.concatenate([params["s"]["w2"].reshape(F), zF]),
        jnp.concatenate([zF, params["t"]["w2"].reshape(F)]),
    ], axis=0).astype(jnp.float32)                                             # (2, 2F)
    b2 = jnp.stack([params["s"]["b2"].reshape(()),
                    params["t"]["b2"].reshape(())]).reshape(2, 1).astype(jnp.float32)

    # --- VMEM limit: sized from the tile, capped at 0.75 * capacity (v7x-safe)
    per_lane = _per_lane_bytes(cp, 2 * F)
    vmem_limit = int(min(int(0.75 * vmem_cap),
                         max(32 * 2 ** 20, 2 * per_lane * tile + (4 << 20))))

    y_flat, jac_parts = _pallas_coupling(
        cflat, halos, x2f, mask, w1_T, b1, w2c, b2,
        inverse=sample_the_data, wp=Wp, tile=tile,
        n_outer=n_outer, n_inner=n_inner, lout_pad=lout_pad,
        vmem_limit=vmem_limit)

    y2 = y_flat[:, 0, :lout].reshape(N, H, Wp)[:, :, :W]
    y2 = y2.reshape(N, 1, H, W).astype(x.dtype)
    output = jnp.concatenate([x1, y2], axis=1)                   # == y2 (x1 empty)
    jacobian = jnp.sum(jac_parts, axis=(1, 2, 3))
    return output, jacobian


# ---------------- deterministic parameter init + pure-JAX reference ----------

def init_params(key, cond_channels, hidden):
    def subnet_params(k):
        k1, k2, k3, k4 = jax.random.split(k, 4)
        return {
            "w1": jax.random.normal(k1, (3, 3, cond_channels, hidden), jnp.float32)
                  * (1.0 / math.sqrt(9 * cond_channels)),     # HWIO
            "b1": jax.random.normal(k2, (hidden,), jnp.float32) * 0.05,
            "w2": jax.random.normal(k3, (hidden, 1), jnp.float32)
                  * (1.0 / math.sqrt(hidden)),
            "b2": jax.random.normal(k4, (1,), jnp.float32) * 0.05,
        }
    ks, kt = jax.random.split(key)
    return {"s": subnet_params(ks), "t": subnet_params(kt)}


def reference_forward(x, c, params, sample_the_data=False):
    c_nhwc = jnp.transpose(c, (0, 2, 3, 1))
    x2 = jnp.transpose(x[:, 0:1], (0, 2, 3, 1))

    def subnet(p):
        h = jax.lax.conv_general_dilated(
            c_nhwc, p["w1"], window_strides=(1, 1), padding="SAME",
            dimension_numbers=("NHWC", "HWIO", "NHWC"),
            precision=jax.lax.Precision.HIGHEST)
        h = jax.nn.relu(h + p["b1"])
        return jnp.einsum("nhwf,fo->nhwo", h, p["w2"],
                          precision=jax.lax.Precision.HIGHEST) + p["b2"]

    s = subnet(params["s"])
    t = subnet(params["t"])
    clamp = ALPHA * jnp.arctan(s)
    if not sample_the_data:
        y2 = jnp.exp(clamp) * x2 + t
        jac = jnp.sum(clamp, axis=(1, 2, 3))
    else:
        y2 = (x2 - t) / jnp.exp(clamp)
        jac = -jnp.sum(clamp, axis=(1, 2, 3))
    out = jnp.transpose(y2, (0, 3, 1, 2))
    out = jnp.concatenate([x[:, :0], out], axis=1)
    return out, jac


if __name__ == "__main__":
    key = jax.random.PRNGKey(0)
    kx, kc, kp = jax.random.split(key, 3)
    N, C, H, W, HIDDEN = 2, 4, 16, 16, 32

    x = jax.random.normal(kx, (N, 1, H, W), jnp.float32)
    c = jax.random.normal(kc, (N, C, H, W), jnp.float32)
    params = init_params(kp, C, HIDDEN)

    # forward path
    out, jac = coupling_one_side_forward(x, c, params, sample_the_data=False)
    out, jac = jax.block_until_ready((out, jac))
    ref_out, ref_jac = reference_forward(x, c, params, sample_the_data=False)
    ref_out, ref_jac = jax.block_until_ready((ref_out, ref_jac))

    assert out.shape == (N, 1, H, W) and jac.shape == (N,)
    assert np.allclose(np.asarray(out), np.asarray(ref_out), rtol=5e-2, atol=1e-1), \
        "output mismatch vs reference (forward)"
    assert np.allclose(np.asarray(jac), np.asarray(ref_jac), rtol=5e-2, atol=5e-1), \
        "jacobian mismatch vs reference (forward)"

    # inverse (sample_the_data=True) path
    out_i, jac_i = coupling_one_side_forward(x, c, params, sample_the_data=True)
    out_i, jac_i = jax.block_until_ready((out_i, jac_i))
    ref_out_i, ref_jac_i = reference_forward(x, c, params, sample_the_data=True)
    assert np.allclose(np.asarray(out_i), np.asarray(ref_out_i), rtol=5e-2, atol=1e-1), \
        "output mismatch vs reference (inverse)"
    assert np.allclose(np.asarray(jac_i), np.asarray(ref_jac_i), rtol=5e-2, atol=5e-1), \
        "jacobian mismatch vs reference (inverse)"

    print("KERNEL_OK")
</pallas_src>

<mosaic_0001>
module attributes {stable_mosaic.version = 11 : i64} {
  func.func @_coupling_kernel(%arg0: i32, %arg1: i32, %arg2: i32, %arg3: memref<1x16x384xbf16, #tpu.memory_space<vmem>>, %arg4: memref<1x1x16x128xbf16, #tpu.memory_space<vmem>>, %arg5: memref<1x1x384xf32, #tpu.memory_space<vmem>>, %arg6: memref<1x384xf32, #tpu.memory_space<vmem>>, %arg7: memref<64x144xbf16, #tpu.memory_space<vmem>>, %arg8: memref<64x1xf32, #tpu.memory_space<vmem>>, %arg9: memref<2x64xf32, #tpu.memory_space<vmem>>, %arg10: memref<2x1xf32, #tpu.memory_space<vmem>>, %arg11: memref<1x1x384xf32, #tpu.memory_space<vmem>>, %arg12: memref<1x1x1x1xf32, #tpu.memory_space<vmem>>) attributes {dimension_semantics = [#tpu.dimension_semantics<parallel>, #tpu.dimension_semantics<parallel>, #tpu.dimension_semantics<arbitrary>], iteration_bounds = array<i64: 2, 1, 1>, scalar_prefetch = 0 : i64, scratch_operands = 0 : i64, tpu.core_type = #tpu.core_type<tc>, window_params = [{transform_indices = @transform_0, window_bounds = array<i64: 1, 16, 384>}, {transform_indices = @transform_1, window_bounds = array<i64: 1, 1, 16, 128>}, {transform_indices = @transform_2, window_bounds = array<i64: 1, 1, 384>}, {transform_indices = @transform_3, window_bounds = array<i64: 1, 384>}, {pipeline_mode = #tpu.pipeline_mode<synchronous>, transform_indices = @transform_4, window_bounds = array<i64: 64, 144>}, {pipeline_mode = #tpu.pipeline_mode<synchronous>, transform_indices = @transform_5, window_bounds = array<i64: 64, 1>}, {pipeline_mode = #tpu.pipeline_mode<synchronous>, transform_indices = @transform_6, window_bounds = array<i64: 2, 64>}, {pipeline_mode = #tpu.pipeline_mode<synchronous>, transform_indices = @transform_7, window_bounds = array<i64: 2, 1>}, {transform_indices = @transform_8, window_bounds = array<i64: 1, 1, 384>}, {transform_indices = @transform_9, window_bounds = array<i64: 1, 1, 1, 1>}]} {
    %c0 = arith.constant 0 : index
    %c0_0 = arith.constant 0 : index
    %c0_1 = arith.constant 0 : index
    %0 = vector.load %arg3[%c0, %c0_0, %c0_1] : memref<1x16x384xbf16, #tpu.memory_space<vmem>>, vector<1x16x384xbf16>
    %1 = vector.shape_cast %0 : vector<1x16x384xbf16> to vector<16x384xbf16>
    %c0_2 = arith.constant 0 : index
    %c0_3 = arith.constant 0 : index
    %c0_4 = arith.constant 0 : index
    %c0_5 = arith.constant 0 : index
    %2 = vector.load %arg4[%c0_2, %c0_3, %c0_4, %c0_5] : memref<1x1x16x128xbf16, #tpu.memory_space<vmem>>, vector<1x1x16x128xbf16>
    %3 = vector.shape_cast %2 : vector<1x1x16x128xbf16> to vector<16x128xbf16>
    %4 = tpu.concatenate %1, %3 in 1 : vector<16x384xbf16>, vector<16x128xbf16> -> vector<16x512xbf16>
    %5 = vector.extract_strided_slice %4 {offsets = [0, 0], sizes = [16, 384], strides = [1, 1]} : vector<16x512xbf16> to vector<16x384xbf16>
    %6 = vector.extract_strided_slice %4 {offsets = [0, 1], sizes = [16, 384], strides = [1, 1]} : vector<16x512xbf16> to vector<16x384xbf16>
    %7 = vector.extract_strided_slice %4 {offsets = [0, 2], sizes = [16, 384], strides = [1, 1]} : vector<16x512xbf16> to vector<16x384xbf16>
    %8 = vector.extract_strided_slice %4 {offsets = [0, 18], sizes = [16, 384], strides = [1, 1]} : vector<16x512xbf16> to vector<16x384xbf16>
    %9 = vector.extract_strided_slice %4 {offsets = [0, 19], sizes = [16, 384], strides = [1, 1]} : vector<16x512xbf16> to vector<16x384xbf16>
    %10 = vector.extract_strided_slice %4 {offsets = [0, 20], sizes = [16, 384], strides = [1, 1]} : vector<16x512xbf16> to vector<16x384xbf16>
    %11 = vector.extract_strided_slice %4 {offsets = [0, 36], sizes = [16, 384], strides = [1, 1]} : vector<16x512xbf16> to vector<16x384xbf16>
    %12 = vector.extract_strided_slice %4 {offsets = [0, 37], sizes = [16, 384], strides = [1, 1]} : vector<16x512xbf16> to vector<16x384xbf16>
    %13 = vector.extract_strided_slice %4 {offsets = [0, 38], sizes = [16, 384], strides = [1, 1]} : vector<16x512xbf16> to vector<16x384xbf16>
    %14 = tpu.concatenate %5, %6, %7, %8, %9, %10, %11, %12, %13 in 0 : vector<16x384xbf16>, vector<16x384xbf16>, vector<16x384xbf16>, vector<16x384xbf16>, vector<16x384xbf16>, vector<16x384xbf16>, vector<16x384xbf16>, vector<16x384xbf16>, vector<16x384xbf16> -> vector<144x384xbf16>
    %c0_6 = arith.constant 0 : index
    %c0_7 = arith.constant 0 : index
    %c0_8 = arith.constant 0 : index
    %15 = vector.load %arg5[%c0_6, %c0_7, %c0_8] : memref<1x1x384xf32, #tpu.memory_space<vmem>>, vector<1x1x384xf32>
    %16 = vector.shape_cast %15 : vector<1x1x384xf32> to vector<1x384xf32>
    %c0_9 = arith.constant 0 : index
    %c0_10 = arith.constant 0 : index
    %17 = vector.load %arg6[%c0_9, %c0_10] : memref<1x384xf32, #tpu.memory_space<vmem>>, vector<1x384xf32>
    %c0_11 = arith.constant 0 : index
    %c0_12 = arith.constant 0 : index
    %18 = vector.load %arg7[%c0_11, %c0_12] : memref<64x144xbf16, #tpu.memory_space<vmem>>, vector<64x144xbf16>
    %cst = arith.constant dense<0.000000e+00> : vector<64x384xf32>
    %19 = tpu.matmul %18, %14, %cst {dimension_numbers = #tpu.dot_dimension_numbers<[1], [0], [0], [1], [0, 0, 1, 1], [], []>} : vector<64x144xbf16>, vector<144x384xbf16>, vector<64x384xf32> -> vector<64x384xf32>
    %c0_13 = arith.constant 0 : index
    %c0_14 = arith.constant 0 : index
    %20 = vector.load %arg8[%c0_13, %c0_14] : memref<64x1xf32, #tpu.memory_space<vmem>>, vector<64x1xf32>
    %21 = vector.broadcast %20 : vector<64x1xf32> to vector<64x384xf32>
    %22 = arith.addf %19, %21 : vector<64x384xf32>
    %cst_15 = arith.constant 0.000000e+00 : f32
    %23 = vector.broadcast %cst_15 : f32 to vector<64x384xf32>
    %24 = arith.maximumf %22, %23 : vector<64x384xf32>
    %c0_16 = arith.constant 0 : index
    %c0_17 = arith.constant 0 : index
    %25 = vector.load %arg9[%c0_16, %c0_17] : memref<2x64xf32, #tpu.memory_space<vmem>>, vector<2x64xf32>
    %cst_18 = arith.constant dense<0.000000e+00> : vector<2x384xf32>
    %26 = tpu.matmul %25, %24, %cst_18 {dimension_numbers = #tpu.dot_dimension_numbers<[1], [0], [0], [1], [0, 0, 1, 1], [], []>} : vector<2x64xf32>, vector<64x384xf32>, vector<2x384xf32> -> vector<2x384xf32>
    %c0_19 = arith.constant 0 : index
    %c0_20 = arith.constant 0 : index
    %27 = vector.load %arg10[%c0_19, %c0_20] : memref<2x1xf32, #tpu.memory_space<vmem>>, vector<2x1xf32>
    %28 = vector.broadcast %27 : vector<2x1xf32> to vector<2x384xf32>
    %29 = arith.addf %26, %28 : vector<2x384xf32>
    %30 = vector.extract_strided_slice %29 {offsets = [0, 0], sizes = [1, 384], strides = [1, 1]} : vector<2x384xf32> to vector<1x384xf32>
    %31 = vector.extract_strided_slice %29 {offsets = [1, 0], sizes = [1, 384], strides = [1, 1]} : vector<2x384xf32> to vector<1x384xf32>
    %cst_21 = arith.constant 0.000000e+00 : f32
    %32 = vector.broadcast %cst_21 : f32 to vector<1x384xf32>
    %33 = arith.cmpf olt, %30, %32 : vector<1x384xf32>
    %cst_22 = arith.constant -1.000000e+00 : f32
    %cst_23 = arith.constant 1.000000e+00 : f32
    %34 = vector.broadcast %cst_22 : f32 to vector<1x384xf32>
    %35 = vector.broadcast %cst_23 : f32 to vector<1x384xf32>
    %36 = arith.select %33, %34, %35 : vector<1x384xi1>, vector<1x384xf32>
    %37 = math.absf %30 : vector<1x384xf32>
    %cst_24 = arith.constant 2.41421366 : f32
    %38 = vector.broadcast %cst_24 : f32 to vector<1x384xf32>
    %39 = arith.cmpf ogt, %37, %38 : vector<1x384xf32>
    %cst_25 = arith.constant dense<true> : vector<1x384xi1>
    %40 = arith.xori %39, %cst_25 : vector<1x384xi1>
    %cst_26 = arith.constant 0.414213568 : f32
    %41 = vector.broadcast %cst_26 : f32 to vector<1x384xf32>
    %42 = arith.cmpf ogt, %37, %41 : vector<1x384xf32>
    %43 = arith.andi %40, %42 : vector<1x384xi1>
    %44 = tpu.reciprocal %37 {approx = true} : vector<1x384xf32> -> vector<1x384xf32>
    %45 = arith.mulf %37, %44 : vector<1x384xf32>
    %cst_27 = arith.constant 2.000000e+00 : f32
    %46 = vector.broadcast %cst_27 : f32 to vector<1x384xf32>
    %47 = arith.subf %46, %45 : vector<1x384xf32>
    %48 = arith.mulf %44, %47 : vector<1x384xf32>
    %cst_28 = arith.constant 1.000000e+00 : f32
    %49 = vector.broadcast %cst_28 : f32 to vector<1x384xf32>
    %50 = arith.addf %37, %49 : vector<1x384xf32>
    %51 = tpu.reciprocal %50 {approx = true} : vector<1x384xf32> -> vector<1x384xf32>
    %52 = arith.mulf %50, %51 : vector<1x384xf32>
    %cst_29 = arith.constant 2.000000e+00 : f32
    %53 = vector.broadcast %cst_29 : f32 to vector<1x384xf32>
    %54 = arith.subf %53, %52 : vector<1x384xf32>
    %55 = arith.mulf %51, %54 : vector<1x384xf32>
    %cst_30 = arith.constant 0.000000e+00 : f32
    %56 = vector.broadcast %cst_30 : f32 to vector<1x384xf32>
    %57 = arith.subf %56, %48 : vector<1x384xf32>
    %cst_31 = arith.constant 1.000000e+00 : f32
    %58 = vector.broadcast %cst_31 : f32 to vector<1x384xf32>
    %59 = arith.subf %37, %58 : vector<1x384xf32>
    %60 = arith.mulf %59, %55 : vector<1x384xf32>
    %61 = arith.select %43, %60, %37 : vector<1x384xi1>, vector<1x384xf32>
    %62 = arith.select %39, %57, %61 : vector<1x384xi1>, vector<1x384xf32>
    %cst_32 = arith.constant 0.785398185 : f32
    %cst_33 = arith.constant 0.000000e+00 : f32
    %63 = vector.broadcast %cst_32 : f32 to vector<1x384xf32>
    %64 = vector.broadcast %cst_33 : f32 to vector<1x384xf32>
    %65 = arith.select %43, %63, %64 : vector<1x384xi1>, vector<1x384xf32>
    %cst_34 = arith.constant 1.57079637 : f32
    %66 = vector.broadcast %cst_34 : f32 to vector<1x384xf32>
    %67 = arith.select %39, %66, %65 : vector<1x384xi1>, vector<1x384xf32>
    %68 = arith.mulf %62, %62 : vector<1x384xf32>
    %cst_35 = arith.constant 0.0805374458 : f32
    %69 = vector.broadcast %cst_35 : f32 to vector<1x384xf32>
    %70 = arith.mulf %69, %68 : vector<1x384xf32>
    %cst_36 = arith.constant 0.138776854 : f32
    %71 = vector.broadcast %cst_36 : f32 to vector<1x384xf32>
    %72 = arith.subf %70, %71 : vector<1x384xf32>
    %73 = arith.mulf %72, %68 : vector<1x384xf32>
    %cst_37 = arith.constant 0.199777111 : f32
    %74 = vector.broadcast %cst_37 : f32 to vector<1x384xf32>
    %75 = arith.addf %73, %74 : vector<1x384xf32>
    %76 = arith.mulf %75, %68 : vector<1x384xf32>
    %cst_38 = arith.constant 0.333329499 : f32
    %77 = vector.broadcast %cst_38 : f32 to vector<1x384xf32>
    %78 = arith.subf %76, %77 : vector<1x384xf32>
    %79 = arith.mulf %78, %68 : vector<1x384xf32>
    %80 = arith.mulf %79, %62 : vector<1x384xf32>
    %81 = arith.addf %67, %80 : vector<1x384xf32>
    %82 = arith.addf %81, %62 : vector<1x384xf32>
    %83 = arith.mulf %36, %82 : vector<1x384xf32>
    %cst_39 = arith.constant 1.144800e+00 : f32
    %84 = vector.broadcast %cst_39 : f32 to vector<1x384xf32>
    %85 = arith.mulf %84, %83 : vector<1x384xf32>
    %86 = math.exp %85 : vector<1x384xf32>
    %87 = arith.mulf %86, %16 : vector<1x384xf32>
    %88 = arith.addf %87, %31 : vector<1x384xf32>
    %c0_40 = arith.constant 0 : index
    %c0_41 = arith.constant 0 : index
    %c0_42 = arith.constant 0 : index
    %89 = vector.load %arg11[%c0_40, %c0_41, %c0_42] : memref<1x1x384xf32, #tpu.memory_space<vmem>>, vector<1x1x384xf32>
    %90 = vector.shape_cast %89 : vector<1x1x384xf32> to vector<1x384xf32>
    %91 = vector.shape_cast %88 : vector<1x384xf32> to vector<1x1x384xf32>
    tpu.vector_store %arg11[%c0_40, %c0_41, %c0_42], %91 {strides = array<i32>} : memref<1x1x384xf32, #tpu.memory_space<vmem>>, vector<1x1x384xf32>,
    %c0_i32 = arith.constant 0 : i32
    %92 = arith.cmpi eq, %arg2, %c0_i32 : i32
    %93 = arith.extui %92 : i1 to i32
    %c0_i32_43 = arith.constant 0 : i32
    %94 = arith.cmpi ne, %93, %c0_i32_43 : i32
    scf.if %94 {
      %cst_54 = arith.constant 0.000000e+00 : f32
      %109 = vector.broadcast %cst_54 : f32 to vector<1x1xf32>
      %c0_55 = arith.constant 0 : index
      %c0_56 = arith.constant 0 : index
      %c0_57 = arith.constant 0 : index
      %c0_58 = arith.constant 0 : index
      %110 = vector.load %arg12[%c0_55, %c0_56, %c0_57, %c0_58] : memref<1x1x1x1xf32, #tpu.memory_space<vmem>>, vector<1x1x1x1xf32>
      %111 = vector.shape_cast %110 : vector<1x1x1x1xf32> to vector<1x1xf32>
      %112 = vector.shape_cast %109 : vector<1x1xf32> to vector<1x1x1x1xf32>
      tpu.vector_store %arg12[%c0_55, %c0_56, %c0_57, %c0_58], %112 {strides = array<i32>} : memref<1x1x1x1xf32, #tpu.memory_space<vmem>>, vector<1x1x1x1xf32>,
    } else {
    }
    %c0_44 = arith.constant 0 : index
    %c0_45 = arith.constant 0 : index
    %c0_46 = arith.constant 0 : index
    %c0_47 = arith.constant 0 : index
    %95 = vector.load %arg12[%c0_44, %c0_45, %c0_46, %c0_47] : memref<1x1x1x1xf32, #tpu.memory_space<vmem>>, vector<1x1x1x1xf32>
    %96 = vector.shape_cast %95 : vector<1x1x1x1xf32> to vector<1x1xf32>
    %97 = arith.mulf %85, %17 : vector<1x384xf32>
    %98 = vector.shape_cast %97 : vector<1x384xf32> to vector<1x1x384xf32>
    %cst_48 = arith.constant dense<0.000000e+00> : vector<1xf32>
    %99 = vector.multi_reduction <add>, %98, %cst_48 [1, 2] : vector<1x1x384xf32> to vector<1xf32>
    %100 = vector.shape_cast %99 : vector<1xf32> to vector<1x1x1xf32>
    %101 = vector.extract %100[0, 0, 0] : f32 from vector<1x1x1xf32>
    %102 = vector.broadcast %101 : f32 to vector<1x1xf32>
    %cst_49 = arith.constant 1.000000e+00 : f32
    %103 = vector.broadcast %cst_49 : f32 to vector<1x1xf32>
    %104 = arith.mulf %103, %102 : vector<1x1xf32>
    %105 = arith.addf %96, %104 : vector<1x1xf32>
    %c0_50 = arith.constant 0 : index
    %c0_51 = arith.constant 0 : index
    %c0_52 = arith.constant 0 : index
    %c0_53 = arith.constant 0 : index
    %106 = vector.load %arg12[%c0_50, %c0_51, %c0_52, %c0_53] : memref<1x1x1x1xf32, #tpu.memory_space<vmem>>, vector<1x1x1x1xf32>
    %107 = vector.shape_cast %106 : vector<1x1x1x1xf32> to vector<1x1xf32>
    %108 = vector.shape_cast %105 : vector<1x1xf32> to vector<1x1x1x1xf32>
    tpu.vector_store %arg12[%c0_50, %c0_51, %c0_52, %c0_53], %108 {strides = array<i32>} : memref<1x1x1x1xf32, #tpu.memory_space<vmem>>, vector<1x1x1x1xf32>,
    return
  }
  func.func @transform_0(%arg0: i32, %arg1: i32, %arg2: i32) -> (i32, i32, i32) {
    %c1_i32 = arith.constant 1 : i32
    %0 = arith.muli %arg1, %c1_i32 : i32
    %1 = arith.addi %0, %arg2 : i32
    %c0_i32 = arith.constant 0 : i32
    %c0_i32_0 = arith.constant 0 : i32
    return %arg0, %c0_i32, %1 : i32, i32, i32
  }
  func.func @transform_1(%arg0: i32, %arg1: i32, %arg2: i32) -> (i32, i32, i32, i32) {
    %c1_i32 = arith.constant 1 : i32
    %0 = arith.muli %arg1, %c1_i32 : i32
    %1 = arith.addi %0, %arg2 : i32
    %c0_i32 = arith.constant 0 : i32
    %c0_i32_0 = arith.constant 0 : i32
    %c0_i32_1 = arith.constant 0 : i32
    return %arg0, %1, %c0_i32, %c0_i32_0 : i32, i32, i32, i32
  }
  func.func @transform_2(%arg0: i32, %arg1: i32, %arg2: i32) -> (i32, i32, i32) {
    %c1_i32 = arith.constant 1 : i32
    %0 = arith.muli %arg1, %c1_i32 : i32
    %1 = arith.addi %0, %arg2 : i32
    %c0_i32 = arith.constant 0 : i32
    %c0_i32_0 = arith.constant 0 : i32
    return %arg0, %c0_i32, %1 : i32, i32, i32
  }
  func.func @transform_3(%arg0: i32, %arg1: i32, %arg2: i32) -> (i32, i32) {
    %c1_i32 = arith.constant 1 : i32
    %0 = arith.muli %arg1, %c1_i32 : i32
    %1 = arith.addi %0, %arg2 : i32
    %c0_i32 = arith.constant 0 : i32
    %c0_i32_0 = arith.constant 0 : i32
    return %c0_i32, %1 : i32, i32
  }
  func.func @transform_4(%arg0: i32, %arg1: i32, %arg2: i32) -> (i32, i32) {
    %c0_i32 = arith.constant 0 : i32
    %c0_i32_0 = arith.constant 0 : i32
    %c0_i32_1 = arith.constant 0 : i32
    return %c0_i32, %c0_i32_0 : i32, i32
  }
  func.func @transform_5(%arg0: i32, %arg1: i32, %arg2: i32) -> (i32, i32) {
    %c0_i32 = arith.constant 0 : i32
    %c0_i32_0 = arith.constant 0 : i32
    %c0_i32_1 = arith.constant 0 : i32
    return %c0_i32, %c0_i32_0 : i32, i32
  }
  func.func @transform_6(%arg0: i32, %arg1: i32, %arg2: i32) -> (i32, i32) {
    %c0_i32 = arith.constant 0 : i32
    %c0_i32_0 = arith.constant 0 : i32
    %c0_i32_1 = arith.constant 0 : i32
    return %c0_i32, %c0_i32_0 : i32, i32
  }
  func.func @transform_7(%arg0: i32, %arg1: i32, %arg2: i32) -> (i32, i32) {
    %c0_i32 = arith.constant 0 : i32
    %c0_i32_0 = arith.constant 0 : i32
    %c0_i32_1 = arith.constant 0 : i32
    return %c0_i32, %c0_i32_0 : i32, i32
  }
  func.func @transform_8(%arg0: i32, %arg1: i32, %arg2: i32) -> (i32, i32, i32) {
    %c1_i32 = arith.constant 1 : i32
    %0 = arith.muli %arg1, %c1_i32 : i32
    %1 = arith.addi %0, %arg2 : i32
    %c0_i32 = arith.constant 0 : i32
    %c0_i32_0 = arith.constant 0 : i32
    return %arg0, %c0_i32, %1 : i32, i32, i32
  }
  func.func @transform_9(%arg0: i32, %arg1: i32, %arg2: i32) -> (i32, i32, i32, i32) {
    %c0_i32 = arith.constant 0 : i32
    %c0_i32_0 = arith.constant 0 : i32
    %c0_i32_1 = arith.constant 0 : i32
    return %arg0, %arg1, %c0_i32, %c0_i32_0 : i32, i32, i32, i32
  }
}

</mosaic_0001>

<bundles_post_ra>
// kernel: tpu_custom_call.1
= control target key start
LH: loop header
LB: loop body
LE: loop exit
PB: predicated region body
PF: predicated region fallthrough
CT: control target
= control target key end

     0   :  { %s2937_s0 = inlined_call_operand.vmem [shape: bf16[2,16,512], index: 0, kind: input, shape index: {}]   ;;  %s2938_s1 = inlined_call_operand.hbm [shape: bf16[2,1,16,128], index: 1, kind: input, shape index: {}]   ;;  %s2939_s2 = inlined_call_operand.vmem [shape: f32[2,1,384], index: 2, kind: input, shape index: {}]   ;;  %s2940_s3 = inlined_call_operand.vmem [shape: f32[1,384], index: 3, kind: input, shape index: {}]   ;;  %s2941_s4 = inlined_call_operand.hbm [shape: bf16[64,144], index: 4, kind: input, shape index: {}]   ;;  %s2942_s5 = inlined_call_operand.vmem [shape: f32[64,1], index: 5, kind: input, shape index: {}]   ;;  %s2943_s6 = inlined_call_operand.vmem [shape: f32[2,64], index: 6, kind: input, shape index: {}]   ;;  %s2944_s7 = inlined_call_operand.vmem [shape: f32[2,1], index: 7, kind: input, shape index: {}]   ;;  %s2945_s8 = inlined_call_operand.hbm [shape: f32[2,1,384], index: 8, kind: output, shape index: {0}]   ;;  %s2946_s9 = inlined_call_operand.vmem [shape: f32[2,1,1,1], index: 9, kind: output, shape index: {1}]  }
   0x1   :  { %2957 = sst [smem:[#allocation16_spill]] %s2945_s8 }
   0x2   :  { %15 = vsyncpa [#allocation4], 0 }
   0x3   :  { %17 = vsyncpa [#allocation4 + $0x1], 0 }
   0x4   :  { %18 = vsyncpa [#allocation7], 0 }
   0x5   :  { %19 = vsyncpa [#allocation5], 0 }
   0x6   :  { %21 = vsyncpa [#allocation5 + $0x1], 0  ;;  %s2523_s30 = smov 0   ;;  %s2525_s10 = smov 0  }
   0x7   :  { %s2527_s11 = smov 0   ;;  %s2529_s12 = smov 0  }
   0x8   :  { %s2531_s13 = smov 0   ;;  %s2533_s14 = smov 0  }
   0x9 LB: > { %2958 = sst [smem:[#allocation12_spill]] %s2425_s30  ;;  %s2006_s15 = sadd.s32 4294967295, %s2445_s14   ;;  %s2445_s14 = sphi %s2533_s14, %s27_s14   ;;  %s2441_s13 = sphi %s2531_s13, %s2991_s13   ;;  %s2437_s12 = sphi %s2529_s12, %s2990_s12   ;;  %s2433_s11 = sphi %s2527_s11, %s2989_s11   ;;  %s2429_s10 = sphi %s2525_s10, %s2988_s10   ;;  %s2425_s30 = sphi %s2523_s30, %s2987_s30  }
   0xa   : > { %s2007_s16 = sadd.s32 4294967294, %s2445_s14   ;;  %s46_s17 = sadd.s32 1, %s2441_s13 }
   0xb   : > { %s57_s18 = sadd.s32 1, %s2433_s11  ;;  %p48_p0 = scmp.ge.s32.totalorder %s46_s17, 2 }
   0xc   : > { %p64_p1 = scmp.ne.s32.totalorder %s2433_s11, %s2429_s10  ;;  %p65_p2 = scmp.eq.s32.totalorder %s2445_s14, 0 }
   0xd   : > { %p100_p3 = scmp.ne.s32.totalorder %s2429_s10, %s2425_s30  ;;  %s2993_s17 = smov (%p48_p0, %s46_s17), 0 }
   0xe   : > { %2959 = sst [smem:[#allocation13_spill]] %s2993_s17  ;;  %p2564_p4 = por %p65_p2, %p64_p1 }
   0xf   : > { %p2568_p5 = scmp.eq.s32.totalorder %s2006_s15, 0  ;;  %s52_s21 = ssub.s32 %s2441_s13, %s2993_s17 }
  0x10   : > { %s2960_s19 = scalar_select %p2564_p4, 1, 0 }
  0x11   : > { %s2961_s20 = scalar_select %p2568_p5, 1, 0 }
  0x12   : > { %p270_p6 = scmp.eq.s32.totalorder %s2006_s15, 1  ;;  %p55_p7 = scmp.eq.s32.totalorder %s52_s21, 0 }
  0x13   : > { %p2576_p8 = por %p2568_p5, %p100_p3  ;;  %p276_p10 = scmp.eq.s32.totalorder %s2007_s16, 1 }
  0x14   : > { %p2580_p9 = por %p270_p6, %p64_p1  ;;  %p2008_p12 = scmp.ge.s32.totalorder %s2445_s14, 1 }
  0x15   : > { %s2962_s22 = scalar_select %p2576_p8, 1, 0 }
  0x16   : > { %s2963_s23 = scalar_select %p2580_p9, 1, 0 }
  0x17   : > { %s2585_s24 = scalar_select %p55_p7, %s2433_s11, %s57_s18  }
  0x18   : > { %p2587_p11 = por %p276_p10, %p100_p3  ;;  %p311_p13 = scmp.lt.s32.totalorder %s2445_s14, 3 }
  0x19   : > { %2964 = sst [smem:[#allocation14_spill]] %s2585_s24  ;;  %s2451_s27 = smov [#allocation6]  }
  0x1a   : > { %s2965_s25 = scalar_select %p2587_p11, 1, 0 }
  0x1b   : > { %p2593_p0 = pnand %p2008_p12, %p311_p13  ;;  %s333_s28 = sshll.u32 %s2451_s27, 4  ;;  %s334_s28 = int_to_ptr.vmem [resolvable:$true] %s333_s28 }
  0x1c   : > { %2966 = sst [smem:[#allocation15_spill]] %s2965_s25  ;;  %s2287_s18 = scalar_lea.hbm %s2941_s4, 1024 }
  0x1d   : > { %s2967_s26 = scalar_select %p2593_p0, 1, 0 }
  0x1e   : > { %p2139_p1 = pneg %p2593_p0  ;;  %p2288_p3 = scmp.ne.s32.totalorder %s2941_s4, %s2287_s18 }
  0x1f   : > { %p2294_p12 = scmp.lt.u32.totalorder %s2287_s18, %s2941_s4 }
  0x20   : > { %p2601_p2 = pnand %p2139_p1, %p2568_p5 }
  0x22   : > { %p2289_p6 = pneg %p2601_p2 }
  0x24   : > { %p2290_p7 = pnand %p2289_p6, %p2288_p3 }
  0x26   : > { %p2291_p10 = pneg %p2290_p7 }
  0x28   : > { %p2296_p13 = pnand %p2294_p12, %p2291_p10 }
  0x2a   : > { %2299 = shalt.err (!%p2296_p13)
}
  0x2b   : > { %s2300_s25 = scalar_lea.vmem %s334_s28, 1024  ;;  %p2308_p5 = scmp.lt.s32.totalorder %s334_s28, %s334_s28 }
  0x2c   : > { %p2301_p1 = scmp.ne.s32.totalorder %s334_s28, %s2300_s25  ;;  %p2309_p8 = scmp.lt.s32.totalorder %s2300_s25, %s2300_s25 }
  0x2e   : > { %p2303_p11 = pnand %p2301_p1, %p2289_p6  ;;  %p2310_p0 = por %p2309_p8, %p2308_p5 }
  0x30   : > { %p2304_p9 = pneg %p2303_p11 }
  0x32   : > { %p2311_p4 = pnand %p2310_p0, %p2304_p9 }
  0x34   : > { %2314 = shalt.err (!%p2311_p4)
}
  0x35   : > { %s2452_s17 = smov 128   ;;  %s2453_s15 = smov 8  }
  0x36   : > { %2142 = dma.hbm_to_vmem [thread:$0]  (!%p2601_p2), %s2941_s4, 1024, %s334_s28, [#allocation7], %s2452_s17, %s2452_s17, %s2453_s15  }
  0x37   : > { %p2011_p3 = scmp.ge.s32.totalorder %s2445_s14, 2 }
  0x38   : > { %p2969_p11 = scmp.ne.s32.totalorder (!%p2011_p3), %s2960_s19, 0 }
  0x39   : > { %352 = sbr.rel (%p2011_p3) target bundleno = 108 (0x6c), region = 36 }
  0x40   : > { %355 = sbr.rel (!%p2969_p11) target bundleno = 81 (0x51), region = 40  ;;  %s357_s24 = sand.u32 (%p2969_p11), 1, %s2433_s11  }
  0x41   : > { %s2066_s25 = sshll.u32 (%p2969_p11), %s2441_s13, 5  ;;  %s2124_s18 = smul.u32 (%p2969_p11), 24, %s357_s24 }
  0x42   : > { %s370_s29 = scalar_lea.vmem (%p2969_p11), %s2937_s0, %s2066_s25   ;;  %s2447_s16 = smov (%p2969_p11), 0  }
  0x43   : > { %s359_s8 = scalar_lea.vmem (%p2969_p11), [#allocation2], %s2124_s18  }
  0x47 LB: >> { %v755_v0 = vld [vmem:[%s370_s29] sm:$0xff]  ;;  %v757_v1 = vld [vmem:[%s370_s29 + $0x10] sm:$0xff]  ;;  %s749_s16 = sadd.s32 1, %s2449_s16   ;;  %s2449_s16 = sphi %s2447_s16, %s749_s16  }
  0x48   : >> { %756 = vst [vmem:[%s359_s8] sm:$0xff] %v755_v0  ;;  %758 = vst [vmem:[%s359_s8 + $0xc] sm:$0xff] %v757_v1  ;;  %p748_p4 = scmp.ge.s32.totalorder %s749_s16, 1 }
  0x49   : > { %v2022_v2 = vld [vmem:[%s370_s29 + $0x8] sm:$0xf] (%p748_p4)  ;;  %v2024_v3 = vld [vmem:[%s370_s29 + $0x18] sm:$0xf] (%p748_p4) }
  0x4a   : > { %751 = sbr.rel (!%p748_p4) target bundleno = 71 (0x47), region = 248  ;;  %2023 = vst [vmem:[%s359_s8 + $0x8] sm:$0xf] (%p748_p4), %v2022_v2  ;;  %2025 = vst [vmem:[%s359_s8 + $0x14] sm:$0xf] (%p748_p4), %v2024_v3 }
  0x51 PF: > { %s783_s30 = sand.u32 1, %s2433_s11   ;;  %s2067_s28 = sshll.u32 %s2441_s13, 7 }
  0x52   : > { %s2026_s17 = sshll.u32 %s783_s30, 3  ;;  %s2636_s24 = scalar_lea.hbm %s2938_s1, %s2067_s28 }
  0x53   : > { %s787_s25 = scalar_lea.vmem [#allocation3], %s2026_s17  ;;  %s2640_s8 = scalar_lea.sflag [#allocation4], %s783_s30 }
  0x54   : > { %s797_s18 = sshll.u32 %s787_s25, 4  ;;  %s2315_s27 = scalar_lea.hbm %s2636_s24, 128  ;;  %s2638_s18 = int_to_ptr.vmem [resolvable:$true] %s797_s18 }
  0x55   : > { %p2316_p5 = scmp.ne.s32.totalorder %s2636_s24, %s2315_s27  ;;  %p2970_p8 = scmp.ne.s32.totalorder %s2960_s19, 0 }
  0x56   : > { %s2319_s28 = scalar_lea.hbm %s2938_s1, 256  ;;  %p2320_p2 = scmp.lt.u32.totalorder %s2636_s24, %s2938_s1 }
  0x57   : > { %p2317_p9 = pnand %p2316_p5, %p2970_p8  ;;  %p2321_p6 = scmp.lt.u32.totalorder %s2319_s28, %s2315_s27 }
  0x58   : > { %p2323_p10 = scmp.lt.u32.totalorder %s2315_s27, %s2636_s24 }
  0x59   : > { %p2318_p0 = pneg %p2317_p9  ;;  %p2322_p7 = por %p2321_p6, %p2320_p2 }
  0x5b   : > { %p2324_p12 = por %p2323_p10, %p2322_p7 }
  0x5d   : > { %p2325_p13 = pnand %p2324_p12, %p2318_p0 }
  0x5f   : > { %2328 = shalt.err (!%p2325_p13)
}
  0x60   : > { %s2329_s30 = scalar_lea.vmem %s2638_s18, 128  ;;  %s2454_s17 = smov [#allocation3]  }
  0x61   : > { %p2330_p1 = scmp.ne.s32.totalorder %s2638_s18, %s2329_s30  ;;  %s2333_s25 = sshll.u32 %s2454_s17, 4  ;;  %s2334_s25 = int_to_ptr.vmem [resolvable:$false] %s2333_s25 }
  0x62   : > { %s2335_s29 = scalar_lea.vmem %s2334_s25, 256  ;;  %p2336_p5 = scmp.lt.s32.totalorder %s2638_s18, %s2334_s25 }
  0x63   : > { %p2331_p11 = pnand %p2330_p1, %p2970_p8  ;;  %p2337_p9 = scmp.lt.s32.totalorder %s2335_s29, %s2329_s30 }
  0x65   : > { %p2332_p4 = pneg %p2331_p11  ;;  %p2338_p2 = por %p2337_p9, %p2336_p5 }
  0x67   : > { %p2339_p6 = pnand %p2338_p2, %p2332_p4 }
  0x69   : > { %2342 = shalt.err (!%p2339_p6)
}
  0x6a   : > { %s2455_s27 = smov 64   ;;  %s2456_s16 = smov 4  }
  0x6b   : > { %2133 = dma.hbm_to_vmem [thread:$0]  (%p2970_p8), %s2636_s24, 128, %s2638_s18, %s2640_s8, %s2455_s27, %s2455_s27, %s2456_s16  }
  0x6c PF: > { %p2971_p0 = scmp.ne.s32.totalorder %s2967_s26, 0 }
  0x6d   : > { %s2667_s28 = sand.u32 (!%p2971_p0), 1, %s2429_s10   ;;  %p2972_p7 = scmp.ne.s32.totalorder (!%p2971_p0), %s2962_s22, 0 }
  0x6e   : > { %823 = sbr.rel (%p2971_p0) target bundleno = 1032 (0x408), region = 114  ;;  %s2030_s21 = sshll.u32 (!%p2971_p0), %s2667_s28, 3 }
  0x6f   : > { %s2125_s15 = smul.u32 (!%p2971_p0), 24, %s2667_s28  ;;  %s833_s17 = scalar_lea.sflag (!%p2971_p0), [#allocation4], %s2667_s28 }
  0x70   : > { %s836_s25 = scalar_lea.vmem (!%p2971_p0), [#allocation3], %s2030_s21 }
  0x71   : > { %s828_s30 = scalar_lea.vmem (!%p2971_p0), [#allocation2], %s2125_s15 }
  0x75   : > { %2412 = dma.done.wait (%p2972_p7), %s833_s17, 128  }
  0x76   : > { %2414 = vsyncadd (%p2972_p7), %s833_s17, 4294967168  ;;  %p2973_p8 = scmp.ne.s32.totalorder %s2961_s20, 0 }
  0x78   : > { %2416 = dma.done.wait (%p2973_p8), [#allocation7], 1024  }
  0x79   : > { %2418 = vsyncadd (%p2973_p8), [#allocation7], 4294966272  ;;  %v2457_v4 = vmov 0   ;;  %v2252_v5 = vld [vmem:[%s828_s30 + $0x4] ss:$12 sps:$4 sm:$0xff]   ;;  %s2458_s19 = smov 127  }
  0x7a   : > { %1260 = vmatprep.subr.bf16.mxu1 %v2457_v4  ;;  %2251 = vset.pattern.permute.xlu1 %v2457_v4  ;;  %v2254_v6 = vld [vmem:[%s828_s30] ss:$12 sps:$4 sm:$0xff]   ;;  %v2255_v7 = vld [vmem:[%s828_s30 + $0x8] ss:$12 sps:$4 sm:$0xff]   ;;  %s2459_s20 = smov 126   ;;  %s2460_s22 = smov 110  }
  0x7b   : > { %2250 = vset.pattern.permute.xlu0 %v2457_v4  ;;  %1187 = vmatprep.subr.bf16.mxu0 %v2252_v5  ;;  %v2256_v8 = vld [vmem:[%s836_s25] sm:$0xff]   ;;  %s2461_s26 = smov 109   ;;  %s2462_s24 = smov 108   ;;  %v2259_v9 = vld [vmem:[#allocation6 + $0x4] ss:$8 sps:$4 sm:$0xff]   ;;  %vm1174_vm0 = vcmask 130048  }
  0x7c   : > { %962 = vrot.lane.b32.xlu0 %v2252_v5, %s2458_s19  ;;  %960 = vrot.lane.b32.xlu1 %v2254_v6, %s2458_s19  ;;  %s2463_s18 = smov 92   ;;  %s2464_s8 = smov 91   ;;  %v1091_v10 = vld [vmem:[%s2942_s5 + $0x8] sm:$0xff]  ;;  %v1090_v11 = vld [vmem:[%s2942_s5] sm:$0xff]  ;;  %vm968_vm1 = vcmask 1039360   ;;  %vm983_vm2 = vcmask 1031168  }
  0x7d   : > { %1188 = vmatpush1.bf16.msra.mxu0 %v2254_v6  ;;  %1261 = vmatpush1.bf16.msra.mxu1 %v2255_v7  ;;  %s2465_s29 = smov 90   ;;  %v1092_v12 = vld [vmem:[%s2942_s5 + $0x10] sm:$0xff]  ;;  %v1093_v13 = vld [vmem:[%s2942_s5 + $0x18] sm:$0xff]  ;;  %v1094_v14 = vld [vmem:[%s2942_s5 + $0x20] sm:$0xff]  ;;  %vm998_vm3 = vcmask 900096   ;;  %vm1013_vm4 = vcmask 891904  }
  0x7e   : > { %1262 = vmatprep.subr.bf16.mxu1 %v2457_v4  ;;  %2044 = vmatprep.mubr.msk.bf16.mxu0 %vm1174_vm0, %v2259_v9  ;;  %v1095_v15 = vld [vmem:[%s2942_s5 + $0x28] sm:$0xff]  ;;  %v1096_v16 = vld [vmem:[%s2942_s5 + $0x30] sm:$0xff]  ;;  %v1097_v17 = vld [vmem:[%s2942_s5 + $0x38] sm:$0xff]  ;;  %vm1028_vm5 = vcmask 883712   ;;  %vm1043_vm6 = vcmask 752640   ;;  %vm1058_vm7 = vcmask 744448  }
  0x7f   : > { %2048 = vmatprep.mubr.msk.bf16.mxu1 %vm1174_vm0, %v2259_v9  ;;  %v1350_v18 = vld [vmem:[%s2944_s7] sm:$0x3]  ;;  %vm1073_vm8 = vcmask 736256   ;;  %v2260_v9 = vld [vmem:[#allocation6 + $0x14] ss:$8 sps:$4 sm:$0xff]   ;;  %vm2468_vm9 = vmmov 0  }
  0x80   : > { %964 = vrot.lane.b32.xlu0 %v2255_v7, %s2458_s19  ;;  %977 = vrot.lane.b32.xlu1 %v2252_v5, %s2459_s20  ;;  %vm1356_vm10 = vcmask 523264   ;;  %vm2469_vm14 = vmmov 1   ;;  %p908_p10 = scmp.lt.s32.totalorder %s2437_s12, 1  ;;  %s2130_s15 = smul.u32 48, %s2437_s12 }
  0x81   : > { %s2980_s25 = sld [smem:[#allocation16_spill]]  ;;  %p2981_p13 = scmp.ne.s32.totalorder %s2963_s23, 0 }
  0x84   : > { %979 = vrot.lane.b32.xlu0 %v2255_v7, %s2459_s20  ;;  %975 = vrot.lane.b32.xlu1 %v2254_v6, %s2459_s20 }
  0x88   : > { %966 = vrot.lane.b32.xlu0 %v2256_v8, %s2458_s19  ;;  %992 = vrot.lane.b32.xlu1 %v2252_v5, %s2460_s22  ;;  %s2859_s19 = scalar_select %p908_p10, %s2437_s12, 1 }
  0x8a   : > { %s2882_s16 = scalar_lea.vmem %s2946_s9, %s2859_s19 }
  0x8c   : > { %994 = vrot.lane.b32.xlu0 %v2255_v7, %s2460_s22  ;;  %990 = vrot.lane.b32.xlu1 %v2254_v6, %s2460_s22 }
  0x90   : > { %981 = vrot.lane.b32.xlu0 %v2256_v8, %s2459_s20  ;;  %1007 = vrot.lane.b32.xlu1 %v2252_v5, %s2461_s26  ;;  %s2127_s20 = smul.u32 3, %s2859_s19  ;;  %s2472_s19 = smov [#allocation8]  }
  0x94   : > { %1009 = vrot.lane.b32.xlu0 %v2255_v7, %s2461_s26  ;;  %1005 = vrot.lane.b32.xlu1 %v2254_v6, %s2461_s26 }
  0x98   : > { %996 = vrot.lane.b32.xlu0 %v2256_v8, %s2460_s22  ;;  %1022 = vrot.lane.b32.xlu1 %v2252_v5, %s2462_s24  ;;  %s1724_s22 = scalar_lea.sflag [#allocation5], %s2667_s28 }
  0x9c   : > { %1024 = vrot.lane.b32.xlu0 %v2255_v7, %s2462_s24  ;;  %1020 = vrot.lane.b32.xlu1 %v2254_v6, %s2462_s24 }
  0xa0   : > { %1011 = vrot.lane.b32.xlu0 %v2256_v8, %s2461_s26  ;;  %1037 = vrot.lane.b32.xlu1 %v2252_v5, %s2463_s18 }
  0xa4   : > { %1039 = vrot.lane.b32.xlu0 %v2255_v7, %s2463_s18  ;;  %1035 = vrot.lane.b32.xlu1 %v2254_v6, %s2463_s18 }
  0xa8   : > { %1026 = vrot.lane.b32.xlu0 %v2256_v8, %s2462_s24  ;;  %1052 = vrot.lane.b32.xlu1 %v2252_v5, %s2464_s8  ;;  %s914_s24 = scalar_lea.vmem %s2939_s2, %s2127_s20  ;;  %s2891_s20 = scalar_lea.hbm %s2980_s25, %s2130_s15 }
  0xac   : > { %1054 = vrot.lane.b32.xlu0 %v2255_v7, %s2464_s8  ;;  %1050 = vrot.lane.b32.xlu1 %v2254_v6, %s2464_s8 }
  0xb0   : > { %1041 = vrot.lane.b32.xlu0 %v2256_v8, %s2463_s18  ;;  %1067 = vrot.lane.b32.xlu1 %v2252_v5, %s2465_s29  ;;  %s2126_s18 = smul.u32 3, %s2667_s28 }
  0xb4   : > { %1069 = vrot.lane.b32.xlu0 %v2255_v7, %s2465_s29  ;;  %1065 = vrot.lane.b32.xlu1 %v2254_v6, %s2465_s29 }
  0xb8   : > { %1056 = vrot.lane.b32.xlu0 %v2256_v8, %s2464_s8  ;;  %1071 = vrot.lane.b32.xlu1 %v2256_v8, %s2465_s29  ;;  %v2257_v8 = vld [vmem:[#allocation6] ss:$8 sps:$4 sm:$0xff]   ;;  %s890_s8 = scalar_lea.vmem [#allocation8], %s2126_s18 }
  0xb9   : > { %s1747_s21 = sshll.u32 %s890_s8, 4  ;;  %s1748_s21 = int_to_ptr.vmem [resolvable:$true] %s1747_s21 }
  0xba   : > { %s2343_s26 = scalar_lea.vmem %s1748_s21, 48 }
  0xbb   : > { %p2344_p12 = scmp.ne.s32.totalorder %s1748_s21, %s2343_s26 }
  0xbc   : > { %1105 = vperm.xlu1 %2251, %v1091_v10   ;;  %1100 = vperm.xlu0 %2250, %v1090_v11  }
  0xbd   : > { %p2345_p1 = pnand %p2344_p12, %p2981_p13 }
  0xbf   : > { %p2346_p11 = pneg %p2345_p1 }
  0xc0   : > { %1110 = vperm.xlu1 %2251, %v1092_v12   ;;  %1115 = vperm.xlu0 %2250, %v1093_v13  }
  0xc4   : > { %1120 = vperm.xlu1 %2251, %v1094_v14   ;;  %1125 = vperm.xlu0 %2250, %v1095_v15   ;;  %v2262_v14 = vld [vmem:[#allocation6 + $0x10] ss:$8 sps:$4 sm:$0xff]   ;;  %v2263_v15 = vld [vmem:[#allocation6 + $0x24] ss:$8 sps:$4 sm:$0xff]  }
  0xc8   : > { %1130 = vperm.xlu1 %2251, %v1096_v16   ;;  %1135 = vperm.xlu0 %2250, %v1097_v17   ;;  %v2265_v16 = vld [vmem:[#allocation6 + $0x20] ss:$8 sps:$4 sm:$0xff]   ;;  %v2266_v17 = vld [vmem:[#allocation6 + $0x34] ss:$8 sps:$4 sm:$0xff]  }
  0xcc   : > { %1353 = vperm.xlu1 %2251, %v1350_v18   ;;  %v2466_v18 = vmov 0.0|0.0  }
  0xee   : > { %v963_v19 = vpop.permute.xlu0 %962  ;;  %v961_v20 = vpop.permute.xlu1 %960 }
  0xef   : > { %v969_v24 = vsel %vm968_vm1, %v961_v20, %v963_v19 }
  0xf2   : > { %v965_v21 = vpop.permute.xlu0 %964  ;;  %v978_v22 = vpop.permute.xlu1 %977 }
  0xf3   : > { %v970_v23 = vsel %vm968_vm1, %v963_v19, %v965_v21  ;;  %v2467_v19 = vmov 0.0  }
  0xf4   : > { %1189 = vmatprep.subr.bf16.mxu0 %v970_v23 }
  0xf5   : > { %1190 = vmatpush1.bf16.msra.mxu0 %v969_v24 }
  0xf6   : > { %v980_v25 = vpop.permute.xlu0 %979  ;;  %v976_v26 = vpop.permute.xlu1 %975 }
  0xf7   : > { %v985_v27 = vsel %vm983_vm2, %v978_v22, %v980_v25  ;;  %v984_v28 = vsel %vm983_vm2, %v976_v26, %v978_v22 }
  0xf8   : > { %1191 = vmatprep.subr.bf16.mxu0 %v985_v27 }
  0xf9   : > { %1192 = vmatpush1.bf16.msra.mxu0 %v984_v28 }
  0xfa   : > { %v967_v29 = vpop.permute.xlu0 %966  ;;  %v993_v30 = vpop.permute.xlu1 %992 }
  0xfb   : > { %v971_v31 = vsel %vm968_vm1, %v965_v21, %v967_v29 }
  0xfc   : > { %1263 = vmatpush1.bf16.msra.mxu1 %v971_v31 }
  0xfd   : > { %1264 = vmatprep.subr.bf16.mxu1 %v2457_v4 }
  0xfe   : > { %v995_v32 = vpop.permute.xlu0 %994  ;;  %v991_v33 = vpop.permute.xlu1 %990 }
  0xff   : > { %v1000_v34 = vsel %vm998_vm3, %v993_v30, %v995_v32  ;;  %v999_v35 = vsel %vm998_vm3, %v991_v33, %v993_v30 }
 0x100   : > { %1193 = vmatprep.subr.bf16.mxu0 %v1000_v34 }
 0x101   : > { %1194 = vmatpush1.bf16.msra.mxu0 %v999_v35 }
 0x102   : > { %v982_v36 = vpop.permute.xlu0 %981  ;;  %v1008_v37 = vpop.permute.xlu1 %1007 }
 0x103   : > { %v986_v38 = vsel %vm983_vm2, %v980_v25, %v982_v36 }
 0x104   : > { %1265 = vmatpush1.bf16.msra.mxu1 %v986_v38 }
 0x105   : > { %1266 = vmatprep.subr.bf16.mxu1 %v2457_v4 }
 0x106   : > { %v1010_v39 = vpop.permute.xlu0 %1009  ;;  %v1006_v40 = vpop.permute.xlu1 %1005 }
 0x107   : > { %v1015_v41 = vsel %vm1013_vm4, %v1008_v37, %v1010_v39  ;;  %v1014_v42 = vsel %vm1013_vm4, %v1006_v40, %v1008_v37 }
 0x108   : > { %1195 = vmatprep.subr.bf16.mxu0 %v1015_v41 }
 0x109   : > { %1196 = vmatpush1.bf16.msra.mxu0 %v1014_v42 }
 0x10a   : > { %v997_v43 = vpop.permute.xlu0 %996  ;;  %v1023_v44 = vpop.permute.xlu1 %1022 }
 0x10b   : > { %v1001_v45 = vsel %vm998_vm3, %v995_v32, %v997_v43 }
 0x10c   : > { %1267 = vmatpush1.bf16.msra.mxu1 %v1001_v45 }
 0x10d   : > { %1268 = vmatprep.subr.bf16.mxu1 %v2457_v4 }
 0x10e   : > { %v1025_v46 = vpop.permute.xlu0 %1024  ;;  %v1021_v47 = vpop.permute.xlu1 %1020 }
 0x10f   : > { %v1030_v48 = vsel %vm1028_vm5, %v1023_v44, %v1025_v46  ;;  %v1029_v49 = vsel %vm1028_vm5, %v1021_v47, %v1023_v44 }
 0x110   : > { %1197 = vmatprep.subr.bf16.mxu0 %v1030_v48 }
 0x111   : > { %1198 = vmatpush1.bf16.msra.mxu0 %v1029_v49 }
 0x112   : > { %v1012_v50 = vpop.permute.xlu0 %1011  ;;  %v1038_v51 = vpop.permute.xlu1 %1037 }
 0x113   : > { %v1016_v52 = vsel %vm1013_vm4, %v1010_v39, %v1012_v50 }
 0x114   : > { %1269 = vmatpush1.bf16.msra.mxu1 %v1016_v52 }
 0x115   : > { %1270 = vmatprep.subr.bf16.mxu1 %v2457_v4 }
 0x116   : > { %v1040_v53 = vpop.permute.xlu0 %1039  ;;  %v1036_v54 = vpop.permute.xlu1 %1035 }
 0x117   : > { %v1045_v55 = vsel %vm1043_vm6, %v1038_v51, %v1040_v53  ;;  %v1044_v56 = vsel %vm1043_vm6, %v1036_v54, %v1038_v51 }
 0x118   : > { %1199 = vmatprep.subr.bf16.mxu0 %v1045_v55 }
 0x119   : > { %1200 = vmatpush1.bf16.msra.mxu0 %v1044_v56 }
 0x11a   : > { %v1027_v57 = vpop.permute.xlu0 %1026  ;;  %v1053_v58 = vpop.permute.xlu1 %1052 }
 0x11b   : > { %v1031_v59 = vsel %vm1028_vm5, %v1025_v46, %v1027_v57 }
 0x11c   : > { %1271 = vmatpush1.bf16.msra.mxu1 %v1031_v59 }
 0x11d   : > { %1272 = vmatprep.subr.bf16.mxu1 %v2457_v4 }
 0x11e   : > { %v1055_v60 = vpop.permute.xlu0 %1054  ;;  %v1051_v61 = vpop.permute.xlu1 %1050 }
 0x11f   : > { %v1060_v62 = vsel %vm1058_vm7, %v1053_v58, %v1055_v60  ;;  %v1059_v63 = vsel %vm1058_vm7, %v1051_v61, %v1053_v58 }
 0x120   : > { %1201 = vmatprep.subr.bf16.mxu0 %v1060_v62 }
 0x121   : > { %1202 = vmatpush1.bf16.msra.mxu0 %v1059_v63 }
 0x122   : > { %v1042_v0 = vpop.permute.xlu0 %1041  ;;  %v1068_v1 = vpop.permute.xlu1 %1067 }
 0x123   : > { %v1046_v2 = vsel %vm1043_vm6, %v1040_v53, %v1042_v0 }
 0x124   : > { %1273 = vmatpush1.bf16.msra.mxu1 %v1046_v2 }
 0x125   : > { %1274 = vmatprep.subr.bf16.mxu1 %v2457_v4 }
 0x126   : > { %v1070_v3 = vpop.permute.xlu0 %1069  ;;  %v1066_v5 = vpop.permute.xlu1 %1065 }
 0x127   : > { %v1075_v6 = vsel %vm1073_vm8, %v1068_v1, %v1070_v3  ;;  %v1074_v7 = vsel %vm1073_vm8, %v1066_v5, %v1068_v1 }
 0x128   : > { %1203 = vmatprep.subr.bf16.mxu0 %v1075_v6 }
 0x129   : > { %1204 = vmatpush1.bf16.msra.mxu0 %v1074_v7 }
 0x12a   : > { %v1057_v10 = vpop.permute.xlu0 %1056  ;;  %v1072_v12 = vpop.permute.xlu1 %1071 }
 0x12b   : > { %v1061_v11 = vsel %vm1058_vm7, %v1055_v60, %v1057_v10  ;;  %v1076_v13 = vsel %vm1073_vm8, %v1070_v3, %v1072_v12 }
 0x12c   : > { %1220 = vmatmul.mubr.bf16.vlgmr.msra.gmra.mrb[0].mxu0 %v2257_v8  ;;  %1275 = vmatpush1.bf16.msra.mxu1 %v1061_v11 }
 0x12d   : > { %1276 = vmatprep.subr.bf16.mxu1 %v2457_v4  ;;  %2045 = vmatprep.mubr.msk.bf16.mxu0 %vm1174_vm0, %v2260_v9  ;;  %v2268_v4 = vld [vmem:[#allocation6 + $0x30] ss:$8 sps:$4 sm:$0xff]  }
 0x130   : > { %1277 = vmatpush1.bf16.msra.mxu1 %v1076_v13 }
 0x131   : > { %2112 = vmatprep.subr.bf16.mxu1 %v2466_v18 }
 0x133   : > { %1293 = vmatmul.mubr.bf16.vlgmr.msra.gmra.mrb[0].mxu1 %v2257_v8 }
 0x134   : > { %1230 = vmatmul.mubr.bf16.gmra.mrb[4].mxu0 %v2262_v14  ;;  %2049 = vmatprep.mubr.msk.bf16.mxu1 %vm1174_vm0, %v2260_v9 }
 0x135   : > { %2046 = vmatprep.mubr.msk.bf16.mxu0 %vm1174_vm0, %v2263_v15 }
 0x13b   : > { %1301 = vmatmul.mubr.bf16.gmra.mrb[4].mxu1 %v2262_v14  ;;  %v1101_v20 = vpop.permute.xlu0 %1100  ;;  %v1106_v21 = vpop.permute.xlu1 %1105 }
 0x13c   : > { %1240 = vmatmul.mubr.bf16.gmra.mrb[8].mxu0 %v2265_v16  ;;  %2050 = vmatprep.mubr.msk.bf16.mxu1 %vm1174_vm0, %v2263_v15 }
 0x13d   : > { %2047 = vmatprep.mubr.msk.bf16.mxu0 %vm1174_vm0, %v2266_v17 }
 0x13f   : > { %v1111_v33 = vpop.permute.xlu1 %1110  ;;  %v1116_v35 = vpop.permute.xlu0 %1115 }
 0x143   : > { %1309 = vmatmul.mubr.bf16.gmra.mrb[8].mxu1 %v2265_v16  ;;  %v1121_v57 = vpop.permute.xlu1 %1120  ;;  %v1126_v60 = vpop.permute.xlu0 %1125 }
 0x144   : > { %1250 = vmatmul.mubr.bf16.gmra.mrb[12].mxu0 %v2268_v4  ;;  %2051 = vmatprep.mubr.msk.bf16.mxu1 %vm1174_vm0, %v2266_v17 }
 0x145   : > { %1424 = vmatprep.mubr.f32.mxu0 %v2467_v19 }
 0x14b   : > { %1317 = vmatmul.mubr.bf16.gmra.mrb[12].mxu1 %v2268_v4  ;;  %v1131_v4 = vpop.permute.xlu1 %1130 }
 0x14c   : > { %2093 = vmatprep.mubr.msk.f32.mxu1 %vm2468_vm9, %v2467_v19 }
 0x1ff   : > { %v1221_v22 = vpop.f32.mrb[0].mxu0 }
 0x200   : > { %v1222_v23 = vadd.f32 %v1221_v22, %v1101_v20  ;;  %v1223_v24 = vpop.f32.mrb[1].mxu0 }
 0x201   : > { %v1224_v25 = vadd.f32 %v1223_v24, %v1101_v20  ;;  %v1225_v26 = vpop.f32.mrb[2].mxu0 }
 0x202   : > { %v1325_v27 = vmax.f32 %v1222_v23, 0.0  ;;  %v1226_v28 = vadd.f32 %v1225_v26, %v1106_v21  ;;  %v1227_v29 = vpop.f32.mrb[3].mxu0  ;;  %v1136_v23 = vpop.permute.xlu0 %1135 }
 0x203   : > { %v1326_v30 = vmax.f32 %v1224_v25, 0.0  ;;  %v1228_v31 = vadd.f32 %v1227_v29, %v1106_v21 }
 0x204   : > { %v1328_v32 = vmax.f32 %v1226_v28, 0.0 }
 0x205   : > { %v1329_v34 = vmax.f32 %v1228_v31, 0.0 }
 0x206   : > { %v2098_v36 = vpack.c.bf16 %v1328_v32, %v1325_v27  ;;  %v1294_v37 = vpop.f32.mrb[0].mxu1 }
 0x207   : > { %v2096_v38 = vpack.c.bf16 %v1329_v34, %v1326_v30  ;;  %v1295_v39 = vadd.f32 %v1294_v37, %v1101_v20  ;;  %v1231_v40 = vpop.f32.mrb[4].mxu0  ;;  %v1296_v41 = vpop.f32.mrb[1].mxu1 }
 0x208   : > { %v1232_v42 = vadd.f32 %v1231_v40, %v1111_v33  ;;  %v1233_v43 = vpop.f32.mrb[5].mxu0  ;;  %v1297_v44 = vpop.f32.mrb[2].mxu1 }
 0x209   : > { %v1234_v45 = vadd.f32 %v1233_v43, %v1111_v33  ;;  %v1298_v46 = vadd.f32 %v1297_v44, %v1106_v21  ;;  %v1235_v47 = vpop.f32.mrb[6].mxu0  ;;  %v1299_v48 = vpop.f32.mrb[3].mxu1  ;;  %2097 = vmatprep.subr.bf16.mxu0 %v2096_v38  ;;  %v1327_v52 = vmax.f32 %v1295_v39, 0.0 }
 0x20a   : > { %v1331_v49 = vmax.f32 %v1232_v42, 0.0  ;;  %v1236_v50 = vadd.f32 %v1235_v47, %v1116_v35  ;;  %v1237_v51 = vpop.f32.mrb[7].mxu0  ;;  %2099 = vmatpush1.bf16.msra.mxu0 %v2098_v36 }
 0x20b   : > { %v1332_v53 = vmax.f32 %v1234_v45, 0.0  ;;  %v1330_v54 = vmax.f32 %v1298_v46, 0.0  ;;  %v1238_v55 = vadd.f32 %v1237_v51, %v1116_v35 }
 0x20c   : > { %v1334_v56 = vmax.f32 %v1236_v50, 0.0 }
 0x20d   : > { %v2113_v58 = vpack.c.bf16 %v1330_v54, %v1327_v52  ;;  %v1335_v59 = vmax.f32 %v1238_v55, 0.0  ;;  %v1349_v55 = vld [vmem:[%s2943_s6] sm:$0x3] }
 0x20e   : > { %v2102_v61 = vpack.c.bf16 %v1334_v56, %v1331_v49  ;;  %v1302_v62 = vpop.f32.mrb[4].mxu1 }
 0x20f   : > { %v2100_v63 = vpack.c.bf16 %v1335_v59, %v1332_v53  ;;  %v1303_v0 = vadd.f32 %v1302_v62, %v1111_v33  ;;  %v1241_v1 = vpop.f32.mrb[8].mxu0  ;;  %v1304_v2 = vpop.f32.mrb[5].mxu1  ;;  %2114 = vmatpush3.bf16.msra.mxu1 %v2113_v58 }
 0x210   : > { %v1242_v3 = vadd.f32 %v1241_v1, %v1121_v57  ;;  %v1243_v5 = vpop.f32.mrb[9].mxu0  ;;  %v1305_v6 = vpop.f32.mrb[6].mxu1  ;;  %2115 = vmatprep.subr.bf16.mxu1 %v2466_v18 }
 0x211   : > { %v1244_v7 = vadd.f32 %v1243_v5, %v1121_v57  ;;  %v1306_v8 = vadd.f32 %v1305_v6, %v1116_v35  ;;  %v1245_v9 = vpop.f32.mrb[10].mxu0  ;;  %v1307_v10 = vpop.f32.mrb[7].mxu1  ;;  %2101 = vmatprep.subr.bf16.mxu0 %v2100_v63  ;;  %v1333_v14 = vmax.f32 %v1303_v0, 0.0 }
 0x212   : > { %v1337_v11 = vmax.f32 %v1242_v3, 0.0  ;;  %v1246_v12 = vadd.f32 %v1245_v9, %v1126_v60  ;;  %v1247_v13 = vpop.f32.mrb[11].mxu0  ;;  %2103 = vmatpush1.bf16.msra.mxu0 %v2102_v61  ;;  %v1354_v59 = vpop.permute.xlu1 %1353 }
 0x213   : > { %v1336_v15 = vmax.f32 %v1306_v8, 0.0  ;;  %v1248_v16 = vadd.f32 %v1247_v13, %v1126_v60  ;;  %v1338_v20 = vmax.f32 %v1244_v7, 0.0 }
 0x214   : > { %v1340_v17 = vmax.f32 %v1246_v12, 0.0 }
 0x215   : > { %v2116_v21 = vpack.c.bf16 %v1336_v15, %v1333_v14  ;;  %v1341_v22 = vmax.f32 %v1248_v16, 0.0 }
 0x216   : > { %v2106_v24 = vpack.c.bf16 %v1340_v17, %v1337_v11  ;;  %v1310_v25 = vpop.f32.mrb[8].mxu1 }
 0x217   : > { %v2104_v26 = vpack.c.bf16 %v1341_v22, %v1338_v20  ;;  %v1311_v27 = vadd.f32 %v1310_v25, %v1121_v57  ;;  %v1251_v28 = vpop.f32.mrb[12].mxu0  ;;  %v1312_v29 = vpop.f32.mrb[9].mxu1  ;;  %2117 = vmatpush3.bf16.msra.mxu1 %v2116_v21 }
 0x218   : > { %v1252_v30 = vadd.f32 %v1251_v28, %v1131_v4  ;;  %v1253_v31 = vpop.f32.mrb[13].mxu0  ;;  %v1313_v32 = vpop.f32.mrb[10].mxu1  ;;  %2118 = vmatprep.subr.bf16.mxu1 %v2466_v18 }
 0x219   : > { %v1254_v33 = vadd.f32 %v1253_v31, %v1131_v4  ;;  %v1314_v34 = vadd.f32 %v1313_v32, %v1126_v60  ;;  %v1255_v35 = vpop.f32.mrb[14].mxu0  ;;  %v1315_v36 = vpop.f32.mrb[11].mxu1  ;;  %2105 = vmatprep.subr.bf16.mxu0 %v2104_v26  ;;  %v1339_v39 = vmax.f32 %v1311_v27, 0.0 }
 0x21a   : > { %v1256_v37 = vadd.f32 %v1255_v35, %v1136_v23  ;;  %v1257_v38 = vpop.f32.mrb[15].mxu0  ;;  %2107 = vmatpush1.bf16.msra.mxu0 %v2106_v24  ;;  %v1343_v42 = vmax.f32 %v1252_v30, 0.0 }
 0x21b   : > { %v1342_v40 = vmax.f32 %v1314_v34, 0.0  ;;  %v1258_v41 = vadd.f32 %v1257_v38, %v1136_v23  ;;  %v1344_v44 = vmax.f32 %v1254_v33, 0.0 }
 0x21c   : > { %v1346_v43 = vmax.f32 %v1256_v37, 0.0 }
 0x21d   : > { %v2119_v45 = vpack.c.bf16 %v1342_v40, %v1339_v39  ;;  %v1347_v46 = vmax.f32 %v1258_v41, 0.0 }
 0x21e   : > { %v2110_v47 = vpack.c.bf16 %v1346_v43, %v1343_v42  ;;  %v1318_v48 = vpop.f32.mrb[12].mxu1 }
 0x21f   : > { %v2108_v49 = vpack.c.bf16 %v1347_v46, %v1344_v44  ;;  %v1319_v50 = vadd.f32 %v1318_v48, %v1131_v4  ;;  %v1320_v51 = vpop.f32.mrb[13].mxu1  ;;  %2120 = vmatpush3.bf16.msra.mxu1 %v2119_v45 }
 0x220   : > { %v1321_v52 = vpop.f32.mrb[14].mxu1  ;;  %2121 = vmatprep.subr.bf16.mxu1 %v2466_v18 }
 0x221   : > { %v1322_v53 = vadd.f32 %v1321_v52, %v1136_v23  ;;  %v1323_v54 = vpop.f32.mrb[15].mxu1  ;;  %2109 = vmatprep.subr.bf16.mxu0 %v2108_v49  ;;  %v1345_v56 = vmax.f32 %v1319_v50, 0.0 }
 0x222   : > { %2111 = vmatpush1.bf16.msra.mxu0 %v2110_v47 }
 0x223   : > { %v1348_v57 = vmax.f32 %v1322_v53, 0.0 }
 0x225   : > { %v2122_v58 = vpack.c.bf16 %v1348_v57, %v1345_v56  ;;  %2052 = vmatmul.mubr.msk.f32.vlgmr.msra.gmra.mrb[16].mxu0 %vm1356_vm10, %v1349_v55 }
 0x227   : > { %2123 = vmatpush3.bf16.msra.mxu1 %v2122_v58 }
 0x22a   : > { %2094 = vmatmul.mubr.msk.f32.vlgmr.msra.gmra.mrb[16].mxu1 %vm1356_vm10, %v1349_v55 }
 0x2f8   : > { %v1426_v60 = vpop.f32.mrb[16].mxu0 }
 0x2f9   : > { %v2759_v61 = vadd.f32 %v1426_v60, %v1354_v59  ;;  %v1428_v18 = vpop.f32.mrb[17].mxu0 }
 0x2fa   : > { %v2761_v62 = vadd.f32 %v1428_v18, %v1354_v59 }
 0x2fb   : > { %v2764_v63 = vand.u32 2147483647, %v2759_v61  ;;  %vm1501_vm8 = vcmp.lt.f32.partialorder %v2759_v61, 0.0 }
 0x2fc   : > { %v2767_v0 = vand.u32 2147483647, %v2761_v62  ;;  %vm1502_vm9 = vcmp.lt.f32.partialorder %v2761_v62, 0.0 }
 0x2fd   : > { %2269 = vrcp.f32 %v2764_v63  ;;  %v1534_v1 = vadd.f32 1.0, %v2764_v63  ;;  %v1497_v2 = vpop.f32.mrb[16].mxu1  ;;  %vm1510_vm11 = vcmp.gt.f32.partialorder %v2764_v63, 2.4142137  ;;  %vm1516_vm12 = vcmp.gt.f32.partialorder %v2764_v63, 0.41421357 }
 0x2fe   : > { %v1535_v3 = vadd.f32 1.0, %v2767_v0  ;;  %v2772_v5 = vadd.f32 %v1497_v2, %v1354_v59  ;;  %v2095_v6 = vpop.f32.mrb[17].mxu1  ;;  %vm1511_vm13 = vcmp.gt.f32.partialorder %v2767_v0, 2.4142137  ;;  %vm1513_vm15 = vmxor %vm1510_vm11, %vm2469_vm14  ;;  %v2054_v24 = vadd.f32 -1.0, %v2764_v63 }
 0x2ff   : > { %2271 = vrcp.f32 %v1534_v1  ;;  %vm1517_vm0 = vcmp.gt.f32.partialorder %v2767_v0, 0.41421357  ;;  %vm1514_vm1 = vmxor %vm1511_vm13, %vm2469_vm14  ;;  %v2055_v31 = vadd.f32 -1.0, %v2767_v0  ;;  %v1616_v6 = vlaneseq }
 0x300   : > { %2273 = vrcp.f32 %v2767_v0  ;;  %v2776_v7 = vand.u32 2147483647, %v2772_v5  ;;  %vm2797_vm2 = vmand %vm1513_vm15, %vm1516_vm12  ;;  %vm1503_vm10 = vcmp.lt.f32.partialorder %v2772_v5, 0.0 }
 0x301   : > { %2275 = vrcp.f32 %v1535_v3  ;;  %vm2809_vm4 = vmand %vm1514_vm1, %vm1517_vm0  ;;  %vm1675_vm12 = vcmp.lt.s32.totalorder %v1616_v6, 384 }
 0x302   : > { %2277 = vrcp.f32 %v2776_v7  ;;  %v1536_v8 = vadd.f32 1.0, %v2776_v7  ;;  %vm1512_vm3 = vcmp.gt.f32.partialorder %v2776_v7, 2.4142137  ;;  %vm1518_vm6 = vcmp.gt.f32.partialorder %v2776_v7, 0.41421357 }
 0x303   : > { %vm1515_vm5 = vmxor %vm1512_vm3, %vm2469_vm14  ;;  %v2056_v47 = vadd.f32 -1.0, %v2776_v7 }
 0x304   : > { %2279 = vrcp.f32 %v1536_v8  ;;  %vm2823_vm7 = vmand %vm1515_vm5, %vm1518_vm6 }
 0x305   : > { %v1566_v33 = vsel %vm2823_vm7, 0.7853982, %v2467_v19 }
 0x307   : > { %v2270_v9 = vpop.eup %2269 }
 0x308   : > { %v1525_v10 = vmul.f32 %v2270_v9, %v2764_v63 }
 0x309   : > { %v2272_v11 = vpop.eup %2271 }
 0x30a   : > { %v2274_v12 = vpop.eup %2273  ;;  %v1528_v13 = vsub.f32 2.0, %v1525_v10  ;;  %v1540_v14 = vmul.f32 %v2272_v11, %v1534_v1 }
 0x30b   : > { %v2276_v15 = vpop.eup %2275  ;;  %v1526_v16 = vmul.f32 %v2274_v12, %v2767_v0 }
 0x30c   : > { %v1543_v17 = vsub.f32 2.0, %v1540_v14  ;;  %v1541_v4 = vmul.f32 %v2276_v15, %v1535_v3  ;;  %v2278_v20 = vpop.eup %2277  ;;  %v1531_v21 = vmul.f32 %v2270_v9, %v1528_v13 }
 0x30d   : > { %v1529_v22 = vsub.f32 2.0, %v1526_v16  ;;  %v1527_v26 = vmul.f32 %v2278_v20, %v2776_v7 }
 0x30e   : > { %v1546_v23 = vmul.f32 %v2272_v11, %v1543_v17  ;;  %v1544_v25 = vsub.f32 2.0, %v1541_v4  ;;  %v2280_v28 = vpop.eup %2279  ;;  %v1549_v34 = vsub.f32 0.0, %v1531_v21  ;;  %v1565_v4 = vsel %vm2809_vm4, 0.7853982, %v2467_v19 }
 0x30f   : > { %v1532_v27 = vmul.f32 %v2274_v12, %v1529_v22  ;;  %v1530_v32 = vsub.f32 2.0, %v1527_v26  ;;  %v1542_v35 = vmul.f32 %v2280_v28, %v1536_v8  ;;  %v1564_v12 = vsel %vm2797_vm2, 0.7853982, %v2467_v19 }
 0x310   : > { %v1555_v29 = vmul.f32 %v2054_v24, %v1546_v23  ;;  %v1547_v30 = vmul.f32 %v2276_v15, %v1544_v25  ;;  %v2836_v15 = vshrl.u32 %v1616_v6, 7  ;;  %v1567_v21 = vsel %vm1510_vm11, 1.5707964, %v1564_v12  ;;  %v1081_v25 = vld [vmem:[%s2940_s3] sm:$0x7] }
 0x311   : > { %v1550_v40 = vsub.f32 0.0, %v1532_v27  ;;  %v1545_v41 = vsub.f32 2.0, %v1542_v35  ;;  %v1533_v44 = vmul.f32 %v2278_v20, %v1530_v32  ;;  %v1568_v27 = vsel %vm1511_vm13, 1.5707964, %v1565_v4 }
 0x312   : > { %v1558_v36 = vsel %vm2797_vm2, %v1555_v29, %v2764_v63  ;;  %v1556_v37 = vmul.f32 %v2055_v31, %v1547_v30  ;;  %v1618_v26 = vsub.s32 0, %v2836_v15  ;;  %v1622_v63 = vsub.s32 1, %v2836_v15 }
 0x313   : > { %v1561_v38 = vsel %vm1510_vm11, %v1549_v34, %v1558_v36  ;;  %v1548_v46 = vmul.f32 %v2280_v28, %v1545_v41  ;;  %v1551_v54 = vsub.f32 0.0, %v1533_v44  ;;  %v2470_v31 = vmov 1.0  }
 0x314   : > { %v1570_v42 = vmul.f32 %v1561_v38, %v1561_v38  ;;  %v1559_v43 = vsel %vm2809_vm4, %v1556_v37, %v2767_v0  ;;  %v1504_v32 = vsel %vm1501_vm8, -1.0, %v2470_v31  ;;  %v1689_v36 = vrot.slane %v1081_v25, %v1618_v26 }
 0x315   : > { %v1562_v45 = vsel %vm1511_vm13, %v1550_v40, %v1559_v43  ;;  %v1557_v50 = vmul.f32 %v2056_v47, %v1548_v46  ;;  %v1505_v37 = vsel %vm1502_vm9, -1.0, %v2470_v31  ;;  %v1626_v44 = vsub.s32 2, %v2836_v15 }
 0x316   : > { %v1573_v48 = vmul.f32 0.080537446, %v1570_v42  ;;  %v1571_v49 = vmul.f32 %v1562_v45, %v1562_v45  ;;  %vm1704_vm11 = vcmask 1040384   ;;  %vm1682_vm13 = vcmask 0  }
 0x317   : > { %v1560_v55 = vsel %vm2823_vm7, %v1557_v50, %v2776_v7  ;;  %1683 = vst.msk [vmem:[%s2882_s16] sm:$0x1] %vm1682_vm13, %v2467_v19 }
 0x318   : > { %v2057_v51 = vadd.f32 -0.13877685, %v1573_v48  ;;  %v1574_v52 = vmul.f32 0.080537446, %v1571_v49  ;;  %v1563_v58 = vsel %vm1512_vm3, %v1551_v54, %v1560_v55  ;;  %v1697_v54 = vrot.slane %v1081_v25, %v1626_v44 }
 0x319   : > { %v1572_v59 = vmul.f32 %v1563_v58, %v1563_v58 }
 0x31a   : > { %v1579_v56 = vmul.f32 %v2057_v51, %v1570_v42  ;;  %v2058_v57 = vadd.f32 -0.13877685, %v1574_v52 }
 0x31b   : > { %v1575_v1 = vmul.f32 0.080537446, %v1572_v59 }
 0x31c   : > { %v1582_v60 = vadd.f32 0.19977711, %v1579_v56  ;;  %v1580_v18 = vmul.f32 %v2058_v57, %v1571_v49  ;;  %v1080_v57 = vld [vmem:[%s914_s24] sm:$0x7]  ;;  %s2347_s24 = sshll.u32 %s2472_s19, 4  ;;  %s2348_s24 = int_to_ptr.vmem [resolvable:$false] %s2347_s24 }
 0x31d   : > { %v2059_v8 = vadd.f32 -0.13877685, %v1575_v1  ;;  %s2349_s18 = scalar_lea.vmem %s2348_s24, 96  ;;  %p2350_p4 = scmp.lt.s32.totalorder %s1748_s21, %s2348_s24 }
 0x31e   : > { %v1585_v2 = vmul.f32 %v1582_v60, %v1570_v42  ;;  %v1583_v3 = vadd.f32 0.19977711, %v1580_v18  ;;  %v1619_v18 = vrot.slane %v1080_v57, %v1618_v26  ;;  %p2351_p5 = scmp.lt.s32.totalorder %s2349_s18, %s2343_s26 }
 0x31f   : > { %v1581_v11 = vmul.f32 %v2059_v8, %v1572_v59  ;;  %v2471_v8 = vmov 1966171168  }
 0x320   : > { %v2060_v9 = vadd.f32 -0.3333295, %v1585_v2  ;;  %v1586_v10 = vmul.f32 %v1583_v3, %v1571_v49  ;;  %v1623_v2 = vrot.slane %v1080_v57, %v1622_v63  ;;  %p2352_p9 = por %p2351_p5, %p2350_p4 }
 0x321   : > { %v1584_v16 = vadd.f32 0.19977711, %v1581_v11 }
 0x322   : > { %v1591_v13 = vmul.f32 %v2060_v9, %v1570_v42  ;;  %v2061_v14 = vadd.f32 -0.3333295, %v1586_v10  ;;  %v1569_v42 = vsel %vm1512_vm3, 1.5707964, %v1566_v33  ;;  %v1651_v9 = vunpack.c.l.s4 %v2471_v8  ;;  %p2353_p2 = pnand %p2352_p9, %p2346_p11 }
 0x323   : > { %v1587_v22 = vmul.f32 %v1584_v16, %v1572_v59  ;;  %v1637_v10 = vrot.slane %v2759_v61, 1 }
 0x324   : > { %v1594_v17 = vmul.f32 %v1591_v13, %v1561_v38  ;;  %v1592_v20 = vmul.f32 %v2061_v14, %v1571_v49  ;;  %v1638_v13 = vrot.slane %v2761_v62, 1  ;;  %v1652_v4 = vunpack.c.0.s8 %v1651_v9 }
 0x325   : > { %v2062_v28 = vadd.f32 -0.3333295, %v1587_v22 }
 0x326   : > { %v1597_v23 = vadd.f32 %v1594_v17, %v1567_v21  ;;  %v1595_v24 = vmul.f32 %v1592_v20, %v1562_v45  ;;  %v1627_v17 = vrot.slane %v1080_v57, %v1626_v44 }
 0x327   : > { %v1593_v34 = vmul.f32 %v2062_v28, %v1572_v59 }
 0x328   : > { %v1600_v29 = vadd.f32 %v1597_v23, %v1561_v38  ;;  %v1598_v30 = vadd.f32 %v1595_v24, %v1568_v27  ;;  %v1693_v38 = vrot.slane %v1081_v25, %v1622_v63  ;;  %v1639_v23 = vrot.slane %v2772_v5, 1 }
 0x329   : > { %v1596_v39 = vmul.f32 %v1593_v34, %v1563_v58  ;;  %v1655_v25 = vsub.s32 %v1652_v4, %v2836_v15 }
 0x32a   : > { %v1603_v0 = vmul.f32 %v1600_v29, %v1504_v32  ;;  %v1601_v35 = vadd.f32 %v1598_v30, %v1562_v45  ;;  %v1506_v45 = vsel %vm1503_vm10, -1.0, %v2470_v31 }
 0x32b   : > { %v1599_v43 = vadd.f32 %v1596_v39, %v1569_v42 }
 0x32c   : > { %v1606_v40 = vmul.f32 1.1448, %v1603_v0  ;;  %v1604_v41 = vmul.f32 %v1601_v35, %v1505_v37 }
 0x32d   : > { %v1602_v49 = vadd.f32 %v1599_v43, %v1563_v58 }
 0x32e   : > { %v1609_v46 = vmul.f32 1.442695, %v1606_v40  ;;  %v1607_v47 = vmul.f32 1.1448, %v1604_v41  ;;  %v1701_v48 = vmul.f32 %v1689_v36, %v1606_v40 }
 0x32f   : > { %v1605_v53 = vmul.f32 %v1602_v49, %v1506_v45 }
 0x330   : > { %2281 = vpow2.f32 %v1609_v46  ;;  %v1611_v50 = vmul.f32 1.442695, %v1607_v47  ;;  %v1702_v51 = vmul.f32 %v1693_v38, %v1607_v47  ;;  %v1705_v52 = vsel %vm1704_vm11, %v1701_v48, 0.0 }
 0x331   : > { %v1608_v55 = vmul.f32 1.1448, %v1605_v53 }
 0x332   : > { %2283 = vpow2.f32 %v1611_v50  ;;  %v1706_v7 = vsel %vm1704_vm11, %v1702_v51, 0.0 }
 0x333   : > { %v1707_v56 = vadd.f32 %v1706_v7, %v1705_v52  ;;  %v1613_v59 = vmul.f32 1.442695, %v1608_v55  ;;  %v1703_v60 = vmul.f32 %v1697_v54, %v1608_v55 }
 0x335   : > { %2285 = vpow2.f32 %v1613_v59  ;;  %v1708_v58 = vsel %vm1704_vm11, %v1703_v60, 0.0 }
 0x336   : > { %v1709_v1 = vadd.f32 %v1708_v58, %v1707_v56 }
 0x338   : > { %1710 = vadd.xlane.f32.xlu0 %v1709_v1 }
 0x33a   : > { %v2282_v3 = vpop.eup %2281 }
 0x33b   : > { %v1631_v11 = vmul.f32 %v2282_v3, %v1619_v18 }
 0x33c   : > { %v2284_v12 = vpop.eup %2283 }
 0x33d   : > { %v1632_v14 = vmul.f32 %v2284_v12, %v1623_v2  ;;  %v1643_v16 = vadd.f32 %v1637_v10, %v1631_v11 }
 0x33f   : > { %v1644_v20 = vadd.f32 %v1638_v13, %v1632_v14  ;;  %v2286_v21 = vpop.eup %2285 }
 0x340   : > { %v1633_v24 = vmul.f32 %v2286_v21, %v1627_v17 }
 0x341   : > { %v1649_v22 = vcombine.low %v1643_v16, %v1644_v20 }
 0x342   : > { %v1645_v26 = vadd.f32 %v1639_v23, %v1633_v24 }
 0x343   : > { %v1656_v61 = vrot.slane %v1649_v22, %v1655_v25 }
 0x344   : > { %v1663_v27 = vrot.slane %v1645_v26, %v1655_v25 }
 0x346   : > { %v1664_v62 = vcombine.low %v1656_v61, %v1663_v27 }
 0x348   : > { %v1671_v28 = vrot.slane %v1664_v62, %v1655_v25 }
 0x34a   : > { %1677 = vst.msk [vmem:[%s890_s8] sm:$0x7] %vm1675_vm12, %v1671_v28 }
 0x34b   : > { %2356 = shalt.err (!%p2353_p2)
}
 0x34c   : > { %s2357_s12 = scalar_lea.hbm %s2891_s20, 48  ;;  %s2361_s29 = scalar_lea.hbm %s2980_s25, 96 }
 0x34d   : > { %p2358_p6 = scmp.ne.s32.totalorder %s2891_s20, %s2357_s12  ;;  %p2362_p8 = scmp.lt.u32.totalorder %s2891_s20, %s2980_s25 }
 0x34e   : > { %p2363_p10 = scmp.lt.u32.totalorder %s2361_s29, %s2357_s12  ;;  %p2365_p1 = scmp.lt.u32.totalorder %s2357_s12, %s2891_s20 }
 0x34f   : > { %p2359_p0 = pnand %p2358_p6, %p2981_p13 }
 0x350   : > { %p2364_p12 = por %p2363_p10, %p2362_p8 }
 0x351   : > { %p2360_p7 = pneg %p2359_p0 }
 0x352   : > { %p2366_p11 = por %p2365_p1, %p2364_p12 }
 0x354   : > { %p2367_p4 = pnand %p2366_p11, %p2360_p7 }
 0x356   : > { %2370 = shalt.err (!%p2367_p4)
}
 0x357   : > { %2137 = dma.vmem_to_hbm [thread:$0]  (%p2981_p13), %s1748_s21, 48, %s2891_s20, %s1724_s22   ;;  %v1684_v31 = vld [vmem:[%s2882_s16] sm:$0x1] }
 0x3c5   : > { %v1711_v19 = vpop.xlane.xlu0 %1710 }
 0x3c6   : > { %v1712_v5 = vrot.slane %v1711_v19, 4 }
 0x3c8   : > { %v1713_v6 = vadd.f32 %v1712_v5, %v1711_v19 }
 0x3ca   : > { %v1714_v15 = vrot.slane %v1713_v6, 2 }
 0x3cc   : > { %v1715_v63 = vadd.f32 %v1714_v15, %v1713_v6 }
 0x3ce   : > { %v1716_v29 = vrot.slane %v1715_v63, 1 }
 0x3d0   : > { %v1717_v30 = vadd.f32 %v1716_v29, %v1715_v63 }
 0x3d2   : > { %2128 = vpush %v1717_v30 }
 0x403   : > { %s2129_s30 = spop %2128 }
 0x404   : > { %v1719_v32 = vstv %s2129_s30 }
 0x405   : > { %v1720_v33 = vadd.f32 %v1719_v32, %v1684_v31 }
 0x407   : > { %1722 = vst.msk [vmem:[%s2882_s16] sm:$0x1] %vm1682_vm13, %v1720_v33 }
 0x408 PF: > { %s2982_s23 = sld [smem:[#allocation12_spill]]  ;;  %s2983_s17 = sld [smem:[#allocation15_spill]] }
 0x40e   : > { %s1762_s26 = sand.u32 1, %s2982_s23   ;;  %p2984_p13 = scmp.ne.s32.totalorder %s2983_s17, 0 }
 0x40f   : > { %s1763_s21 = scalar_lea.sflag [#allocation5], %s1762_s26 }
 0x410   : > { %p2144_p5 = pnand %p2011_p3, %p2984_p13 }
 0x412   : > { %2420 = dma.done.wait (!%p2144_p5), %s1763_s21, 48  }
 0x413   : > { %2422 = vsyncadd (!%p2144_p5), %s1763_s21, 4294967248  ;;  %s27_s14 = sadd.s32 1, %s2445_s14   ;;  %s2985_s20 = sld [smem:[#allocation14_spill]] }
 0x414   : > { %p24_p9 = scmp.ge.s32.totalorder %s27_s14, 4   ;;  %s2986_s22 = sld [smem:[#allocation13_spill]] }
 0x415   : > { %s2987_s30 = smov %s2429_s10  ;;  %s2988_s10 = smov %s2433_s11 }
 0x416   : > { %s2990_s12 = smov %s2441_s13  ;;  %26 = sbr.rel (!%p24_p9) target bundleno = 9 (0x9), region = 259 }
 0x419   : > { %s2989_s11 = smov %s2985_s20 }
 0x41a   : > { %s2991_s13 = smov %s2986_s22 }
 0x41d   :  { %1777 = vsyncpa [#allocation4], 1 }
 0x41e   :  { %1779 = vsyncpa [#allocation4 + $0x1], 1 }
 0x41f   :  { %1780 = vsyncpa [#allocation7], 1 }
 0x420   :  { %1781 = vsyncpa [#allocation5], 1 }
 0x421   :  { %1783 = vsyncpa [#allocation5 + $0x1], 1 }

</bundles_post_ra>
